<compile_context>
chip_gen: v7x
topology: tpu7x:2x2x1
jax: 0.10.0
libtpu: 0.0.40
codegen_flags: <defaults>
</compile_context>

<pallas_src>
import functools
import math

import jax
import jax.numpy as jnp
import numpy as np
from jax.experimental import pallas as pl
from jax.experimental.pallas import tpu as pltpu


def _feedback_attention_kernel(q_ref, k_ref, v_ref,
                               wq_ref, wk_ref, wv_ref, bv_ref,
                               kpe_ref, kpb_ref, qpb_ref, rep_ref,
                               wo_ref, bo_ref,
                               out_ref,
                               *, scale, compute_dtype, approx_recip):
    """One grid step = one tile of b_tile batch elements (everything batched).

    Ref layouts (hd / d_model always on the lane axis, seq on the major axis):
      q_ref [B, d_model]        k_ref / v_ref [seq, B, d_model]   (native layout)
      wq/wk/wv [d_model, hd]    wo [hd, d_model]   bv [1, hd]   bo [1, d_model]
      kpe [seq, hd]   kpb [seq, hd] (per-d_k replicated)   qpb [1, hd]
      rep [hd, hd] block-diagonal head indicator            out_ref [B, d_model]
    """
    f32 = jnp.float32
    cdt = compute_dtype
    B, d_model = q_ref.shape
    seq = k_ref.shape[0]
    hd = wq_ref.shape[1]

    def mxdot(a, b):
        # MXU matmul with f32 accumulation; operands cast to the compute dtype
        # (bf16 fast path on v6e/v7x, no-op in exact f32 mode).
        return jnp.dot(a.astype(cdt), b.astype(cdt), preferred_element_type=f32)

    q = q_ref[...]                                        # [B, d_model]
    k2 = k_ref[...].reshape(seq * B, d_model)             # [seq*B, d_model]
    v2 = v_ref[...].reshape(seq * B, d_model)             # [seq*B, d_model]

    # ---- Projections: three large, lane-dense MXU matmuls (K = d_model) -------
    qh = mxdot(q, wq_ref[...])                            # [B, hd]      f32
    kh = mxdot(k2, wk_ref[...])                           # [seq*B, hd]  f32
    vh = mxdot(v2, wv_ref[...]) + bv_ref[...]             # [seq*B, hd]  f32

    # ---- Relative-position scores, fully batched; scale hoisted onto q terms --
    qq = (qh + qpb_ref[...]) * scale                      # [B, hd]
    qs = qh * scale                                       # [B, hd]
    kh3 = kh.reshape(seq, B, hd)
    kpe = kpe_ref[...]                                    # [seq, hd] f32
    t = kh3 * qq[None, :, :] + kpe[:, None, :] * qs[None, :, :]      # [seq, B, hd]

    # Head-segment sum over d_k, replicated back across each head's d_k lanes,
    # done as ONE block-diagonal [seq*B, hd] @ [hd, hd] matmul per step (fuses
    # the reduce and the broadcast; replaces the per-b sliver matmuls of v2 and
    # keeps every tensor in the hd-on-lanes layout -> no relayouts).
    s_exp = mxdot(t.reshape(seq * B, hd), rep_ref[...]).reshape(seq, B, hd)
    scores = s_exp + (kpb_ref[...] * scale)[:, None, :]   # [seq, B, hd]

    # ---- Softmax over seq (major axis -> cheap cross-vreg accumulation) -------
    m = jnp.max(scores, axis=0, keepdims=True)
    e = jnp.exp(scores - m)
    denom = jnp.sum(e, axis=0, keepdims=True)
    attn = e * pl.reciprocal(denom, approx=approx_recip)  # [seq, B, hd]
    # TODO(synk): attention dropout omitted (eval-mode identity).

    # ---- Value-weighted sum over seq: VPU multiply + major-axis accumulate ----
    x = jnp.sum(attn * vh.reshape(seq, B, hd), axis=0)    # [B, hd]  (stays in vregs)

    # ---- Output projection for the whole tile ----------------------------------
    out = mxdot(x, wo_ref[...]) + bo_ref[...]             # [B, d_model]
    out_ref[...] = out.astype(out_ref.dtype)


def _pick_b_tile(batch, max_b_tile=64, min_grid_tiles=2):
    """Largest divisor of batch <= max_b_tile, preferring >= min_grid_tiles grid tiles
    so the parallel grid axis can be sharded across both v7x TensorCores."""
    divisors = [d for d in range(1, batch + 1) if batch % d == 0]
    good = [d for d in divisors if d <= max_b_tile and batch // d >= min_grid_tiles]
    if good:
        return max(good)
    ok = [d for d in divisors if d <= max_b_tile]
    return max(ok) if ok else 1


def feedback_attention(query, key, value, params, *, heads, d_k,
                       compute_dtype=jnp.bfloat16, max_b_tile=64, min_grid_tiles=2):
    """query: [batch, d_model]; key/value: [seq, batch, d_model] (PyTorch layout).

    compute_dtype feeds the MXU operands only (accumulation and elementwise math
    stay f32): jnp.float32 for bit-faithful eval, jnp.bfloat16 for the fast path.
    """
    seq, batch, d_model = key.shape
    hd = heads * d_k
    scale = 1.0 / math.sqrt(d_k)
    cdt = compute_dtype
    approx_recip = jnp.dtype(cdt) != jnp.dtype(jnp.float32)

    b_tile = _pick_b_tile(batch, max_b_tile, min_grid_tiles)
    n_tiles = batch // b_tile

    # ---- Free (no-transpose) reshapes only: split batch into (n_tiles, b_tile) ----
    q3 = query.reshape(n_tiles, b_tile, d_model)
    k4 = key.reshape(seq, n_tiles, b_tile, d_model)
    v4 = value.reshape(seq, n_tiles, b_tile, d_model)

    # Weights (MXU operands) cast once in the wrapper; everything else stays f32.
    wq = params["w_query"].astype(cdt)                                  # [d_model, hd]
    wk = params["w_key"].astype(cdt)                                    # [d_model, hd]
    wv = params["w_value"].astype(cdt)                                  # [d_model, hd]
    wo = params["w_out"].astype(cdt)                                    # [hd, d_model]
    bv = params["b_value"].reshape(1, hd).astype(jnp.float32)
    bo = params["b_out"].reshape(1, d_model).astype(jnp.float32)
    kpe = params["key_pos_embeddings"][-seq:].reshape(seq, hd).astype(jnp.float32)
    kpb = jnp.repeat(params["key_pos_bias"][-seq:].astype(jnp.float32), d_k, axis=1)  # [seq, hd]
    qpb = params["query_pos_bias"].reshape(1, hd).astype(jnp.float32)
    # Block-diagonal head indicator (fused d_k reduce + broadcast), hoisted constant.
    seg = jnp.arange(hd, dtype=jnp.int32) // d_k
    rep = (seg[:, None] == seg[None, :]).astype(cdt)                    # [hd, hd], 0/1

    kernel = functools.partial(_feedback_attention_kernel, scale=scale,
                               compute_dtype=cdt, approx_recip=approx_recip)

    # Explicit VMEM budget (generation-aware: v7x only has 64 MiB physical VMEM).
    in_item = jnp.dtype(query.dtype).itemsize
    c_item = jnp.dtype(cdt).itemsize
    per_step_in = (b_tile * d_model + 2 * seq * b_tile * d_model) * in_item
    const_bytes = (4 * d_model * hd + hd * hd) * c_item \
        + (2 * seq * hd + 2 * hd + 2 * d_model) * 4
    out_bytes = b_tile * d_model * 4
    interm_bytes = (6 * seq * b_tile * hd + 6 * b_tile * hd) * 4
    est = 2 * (per_step_in + out_bytes) + const_bytes + interm_bytes
    vmem_limit = int(min(max(2 * est, 32 * 2 ** 20), 64 * 2 ** 20))

    def build(single_buffer_consts):
        def const_spec(shape):
            # Constant-index operands are re-used every grid step; single-buffer them.
            if single_buffer_consts:
                return pl.BlockSpec(shape, lambda i: (0,) * len(shape),
                                    pipeline_mode=pl.Buffered(1))
            return pl.BlockSpec(shape, lambda i: (0,) * len(shape))

        return pl.pallas_call(
            kernel,
            out_shape=jax.ShapeDtypeStruct((n_tiles, b_tile, d_model), jnp.float32),
            grid=(n_tiles,),
            in_specs=[
                pl.BlockSpec((None, b_tile, d_model), lambda i: (i, 0, 0)),          # query tile
                pl.BlockSpec((seq, None, b_tile, d_model), lambda i: (0, i, 0, 0)),  # key (native)
                pl.BlockSpec((seq, None, b_tile, d_model), lambda i: (0, i, 0, 0)),  # value (native)
                const_spec((d_model, hd)),   # W_query
                const_spec((d_model, hd)),   # W_key
                const_spec((d_model, hd)),   # W_value
                const_spec((1, hd)),         # b_value
                const_spec((seq, hd)),       # key_pos_embeddings (sliced, flattened)
                const_spec((seq, hd)),       # key_pos_bias (sliced, per-d_k replicated)
                const_spec((1, hd)),         # query_pos_bias
                const_spec((hd, hd)),        # block-diag head indicator
                const_spec((hd, d_model)),   # W_out
                const_spec((1, d_model)),    # b_out
            ],
            out_specs=pl.BlockSpec((None, b_tile, d_model), lambda i: (i, 0, 0)),
            compiler_params=pltpu.CompilerParams(
                dimension_semantics=("parallel",),
                vmem_limit_bytes=vmem_limit),
        )

    args = (q3, k4, v4, wq, wk, wv, bv, kpe, kpb, qpb, rep, wo, bo)
    try:
        out = build(True)(*args)
    except Exception:
        # Fallback for JAX builds without BlockSpec pipeline_mode / Buffered(1) support.
        out = build(False)(*args)

    return out.reshape(batch, d_model)


def feedback_attention_reference(query, key, value, params, *, heads, d_k):
    """Plain-JAX reference mirroring the PyTorch forward exactly (dropout = identity)."""
    seq, batch, d_model = key.shape
    scale = 1.0 / math.sqrt(d_k)
    hp = jax.lax.Precision.HIGHEST
    q = jnp.dot(query, params["w_query"], precision=hp).reshape(batch, heads, d_k)
    k = jnp.dot(key, params["w_key"], precision=hp).reshape(seq, batch, heads, d_k)
    v = (jnp.dot(value, params["w_value"], precision=hp)
         + params["b_value"]).reshape(seq, batch, heads, d_k)
    kpe = params["key_pos_embeddings"][-seq:]
    kpb = params["key_pos_bias"][-seq:]
    qpb = params["query_pos_bias"]
    ac = jnp.einsum('bhd,jbhd->jbh', q + qpb[None], k, precision=hp)
    bd = jnp.einsum('bhd,jhd->jbh', q, kpe, precision=hp) + kpb[:, None, :]
    scores = (ac + bd) * scale
    attn = jax.nn.softmax(scores, axis=0)
    x = jnp.einsum('jbh,jbhd->bhd', attn, v, precision=hp).reshape(batch, heads * d_k)
    return jnp.dot(x, params["w_out"], precision=hp) + params["b_out"]


if __name__ == "__main__":
    heads, d_model, seq, batch = 4, 32, 8, 2
    d_k = d_model // heads
    P = 2 ** 12  # matches self.P in the module

    root = jax.random.PRNGKey(0)
    ks = jax.random.split(root, 12)

    def init(k, shape, s=0.1):
        return jax.random.normal(k, shape, dtype=jnp.float32) * s

    # Deterministic synthetic parameters (shapes match the module's __init__;
    # positional params get nonzero values so every score term is exercised).
    params = {
        "w_query": init(ks[0], (d_model, heads * d_k)),
        "w_key": init(ks[1], (d_model, heads * d_k)),
        "w_value": init(ks[2], (d_model, heads * d_k)),
        "b_value": init(ks[3], (heads * d_k,)),
        "w_out": init(ks[4], (heads * d_k, d_model)),
        "b_out": init(ks[5], (d_model,)),
        "key_pos_embeddings": init(ks[6], (P, heads, d_k)),
        "key_pos_bias": init(ks[7], (P, heads)),
        "query_pos_bias": init(ks[8], (heads, d_k)),
    }

    query = init(ks[9], (batch, d_model), 1.0)
    key = init(ks[10], (seq, batch, d_model), 1.0)
    value = init(ks[11], (seq, batch, d_model), 1.0)

    ref = feedback_attention_reference(query, key, value, params, heads=heads, d_k=d_k)
    ref = jax.block_until_ready(ref)

    # Exact f32 mode: must match the reference tightly.
    out_f32 = feedback_attention(query, key, value, params, heads=heads, d_k=d_k,
                                 compute_dtype=jnp.float32)
    out_f32 = jax.block_until_ready(out_f32)
    np.testing.assert_allclose(np.asarray(out_f32), np.asarray(ref), rtol=1e-4, atol=1e-4)

    # Fast path (bf16 MXU operands + EUP approx reciprocal): looser tolerance.
    out_fast = feedback_attention(query, key, value, params, heads=heads, d_k=d_k,
                                  compute_dtype=jnp.bfloat16)
    out_fast = jax.block_until_ready(out_fast)
    np.testing.assert_allclose(np.asarray(out_fast), np.asarray(ref), rtol=5e-2, atol=5e-2)

    print("KERNEL_OK")
</pallas_src>

<mosaic_0001>
module attributes {stable_mosaic.version = 11 : i64} {
  func.func @_feedback_attention_kernel(%arg0: i32, %arg1: memref<1x1x32xf32, #tpu.memory_space<vmem>>, %arg2: memref<8x1x1x32xf32, #tpu.memory_space<vmem>>, %arg3: memref<8x1x1x32xf32, #tpu.memory_space<vmem>>, %arg4: memref<32x32xf32, #tpu.memory_space<vmem>>, %arg5: memref<32x32xf32, #tpu.memory_space<vmem>>, %arg6: memref<32x32xf32, #tpu.memory_space<vmem>>, %arg7: memref<1x32xf32, #tpu.memory_space<vmem>>, %arg8: memref<8x32xf32, #tpu.memory_space<vmem>>, %arg9: memref<8x32xf32, #tpu.memory_space<vmem>>, %arg10: memref<1x32xf32, #tpu.memory_space<vmem>>, %arg11: memref<32x32xf32, #tpu.memory_space<vmem>>, %arg12: memref<32x32xf32, #tpu.memory_space<vmem>>, %arg13: memref<1x32xf32, #tpu.memory_space<vmem>>, %arg14: memref<1x1x32xf32, #tpu.memory_space<vmem>>) attributes {dimension_semantics = [#tpu.dimension_semantics<parallel>], iteration_bounds = array<i64: 2>, scalar_prefetch = 0 : i64, scratch_operands = 0 : i64, tpu.core_type = #tpu.core_type<tc>, window_params = [{transform_indices = @transform_0, window_bounds = array<i64: 1, 1, 32>}, {transform_indices = @transform_1, window_bounds = array<i64: 8, 1, 1, 32>}, {transform_indices = @transform_2, window_bounds = array<i64: 8, 1, 1, 32>}, {pipeline_mode = #tpu.pipeline_mode<synchronous>, transform_indices = @transform_3, window_bounds = array<i64: 32, 32>}, {pipeline_mode = #tpu.pipeline_mode<synchronous>, transform_indices = @transform_4, window_bounds = array<i64: 32, 32>}, {pipeline_mode = #tpu.pipeline_mode<synchronous>, transform_indices = @transform_5, window_bounds = array<i64: 32, 32>}, {pipeline_mode = #tpu.pipeline_mode<synchronous>, transform_indices = @transform_6, window_bounds = array<i64: 1, 32>}, {pipeline_mode = #tpu.pipeline_mode<synchronous>, transform_indices = @transform_7, window_bounds = array<i64: 8, 32>}, {pipeline_mode = #tpu.pipeline_mode<synchronous>, transform_indices = @transform_8, window_bounds = array<i64: 8, 32>}, {pipeline_mode = #tpu.pipeline_mode<synchronous>, transform_indices = @transform_9, window_bounds = array<i64: 1, 32>}, {pipeline_mode = #tpu.pipeline_mode<synchronous>, transform_indices = @transform_10, window_bounds = array<i64: 32, 32>}, {pipeline_mode = #tpu.pipeline_mode<synchronous>, transform_indices = @transform_11, window_bounds = array<i64: 32, 32>}, {pipeline_mode = #tpu.pipeline_mode<synchronous>, transform_indices = @transform_12, window_bounds = array<i64: 1, 32>}, {transform_indices = @transform_13, window_bounds = array<i64: 1, 1, 32>}]} {
    %c0 = arith.constant 0 : index
    %c0_0 = arith.constant 0 : index
    %c0_1 = arith.constant 0 : index
    %0 = vector.load %arg1[%c0, %c0_0, %c0_1] : memref<1x1x32xf32, #tpu.memory_space<vmem>>, vector<1x1x32xf32>
    %1 = vector.shape_cast %0 : vector<1x1x32xf32> to vector<1x32xf32>
    %c0_2 = arith.constant 0 : index
    %c0_3 = arith.constant 0 : index
    %c0_4 = arith.constant 0 : index
    %c0_5 = arith.constant 0 : index
    %2 = vector.load %arg2[%c0_2, %c0_3, %c0_4, %c0_5] : memref<8x1x1x32xf32, #tpu.memory_space<vmem>>, vector<8x1x1x32xf32>
    %3 = vector.shape_cast %2 : vector<8x1x1x32xf32> to vector<8x1x32xf32>
    %4 = vector.shape_cast %3 : vector<8x1x32xf32> to vector<8x32xf32>
    %c0_6 = arith.constant 0 : index
    %c0_7 = arith.constant 0 : index
    %c0_8 = arith.constant 0 : index
    %c0_9 = arith.constant 0 : index
    %5 = vector.load %arg3[%c0_6, %c0_7, %c0_8, %c0_9] : memref<8x1x1x32xf32, #tpu.memory_space<vmem>>, vector<8x1x1x32xf32>
    %6 = vector.shape_cast %5 : vector<8x1x1x32xf32> to vector<8x1x32xf32>
    %7 = vector.shape_cast %6 : vector<8x1x32xf32> to vector<8x32xf32>
    %c0_10 = arith.constant 0 : index
    %c0_11 = arith.constant 0 : index
    %8 = vector.load %arg4[%c0_10, %c0_11] : memref<32x32xf32, #tpu.memory_space<vmem>>, vector<32x32xf32>
    %cst = arith.constant dense<0.000000e+00> : vector<1x32xf32>
    %9 = tpu.matmul %1, %8, %cst {dimension_numbers = #tpu.dot_dimension_numbers<[1], [0], [0], [1], [0, 0, 1, 1], [], []>} : vector<1x32xf32>, vector<32x32xf32>, vector<1x32xf32> -> vector<1x32xf32>
    %c0_12 = arith.constant 0 : index
    %c0_13 = arith.constant 0 : index
    %10 = vector.load %arg5[%c0_12, %c0_13] : memref<32x32xf32, #tpu.memory_space<vmem>>, vector<32x32xf32>
    %cst_14 = arith.constant dense<0.000000e+00> : vector<8x32xf32>
    %11 = tpu.matmul %4, %10, %cst_14 {dimension_numbers = #tpu.dot_dimension_numbers<[1], [0], [0], [1], [0, 0, 1, 1], [], []>} : vector<8x32xf32>, vector<32x32xf32>, vector<8x32xf32> -> vector<8x32xf32>
    %c0_15 = arith.constant 0 : index
    %c0_16 = arith.constant 0 : index
    %12 = vector.load %arg6[%c0_15, %c0_16] : memref<32x32xf32, #tpu.memory_space<vmem>>, vector<32x32xf32>
    %cst_17 = arith.constant dense<0.000000e+00> : vector<8x32xf32>
    %13 = tpu.matmul %7, %12, %cst_17 {dimension_numbers = #tpu.dot_dimension_numbers<[1], [0], [0], [1], [0, 0, 1, 1], [], []>} : vector<8x32xf32>, vector<32x32xf32>, vector<8x32xf32> -> vector<8x32xf32>
    %c0_18 = arith.constant 0 : index
    %c0_19 = arith.constant 0 : index
    %14 = vector.load %arg7[%c0_18, %c0_19] : memref<1x32xf32, #tpu.memory_space<vmem>>, vector<1x32xf32>
    %15 = vector.broadcast %14 : vector<1x32xf32> to vector<8x32xf32>
    %16 = arith.addf %13, %15 : vector<8x32xf32>
    %c0_20 = arith.constant 0 : index
    %c0_21 = arith.constant 0 : index
    %17 = vector.load %arg10[%c0_20, %c0_21] : memref<1x32xf32, #tpu.memory_space<vmem>>, vector<1x32xf32>
    %18 = arith.addf %9, %17 : vector<1x32xf32>
    %cst_22 = arith.constant 0.353553385 : f32
    %19 = vector.broadcast %cst_22 : f32 to vector<1x32xf32>
    %20 = arith.mulf %18, %19 : vector<1x32xf32>
    %cst_23 = arith.constant 0.353553385 : f32
    %21 = vector.broadcast %cst_23 : f32 to vector<1x32xf32>
    %22 = arith.mulf %9, %21 : vector<1x32xf32>
    %23 = vector.shape_cast %11 : vector<8x32xf32> to vector<8x1x32xf32>
    %c0_24 = arith.constant 0 : index
    %c0_25 = arith.constant 0 : index
    %24 = vector.load %arg8[%c0_24, %c0_25] : memref<8x32xf32, #tpu.memory_space<vmem>>, vector<8x32xf32>
    %25 = vector.shape_cast %20 : vector<1x32xf32> to vector<1x1x32xf32>
    %26 = vector.broadcast %25 : vector<1x1x32xf32> to vector<8x1x32xf32>
    %27 = arith.mulf %23, %26 : vector<8x1x32xf32>
    %28 = vector.shape_cast %24 : vector<8x32xf32> to vector<8x1x32xf32>
    %29 = vector.shape_cast %22 : vector<1x32xf32> to vector<1x1x32xf32>
    %30 = vector.broadcast %29 : vector<1x1x32xf32> to vector<8x1x32xf32>
    %31 = arith.mulf %28, %30 : vector<8x1x32xf32>
    %32 = arith.addf %27, %31 : vector<8x1x32xf32>
    %33 = vector.shape_cast %32 : vector<8x1x32xf32> to vector<8x32xf32>
    %c0_26 = arith.constant 0 : index
    %c0_27 = arith.constant 0 : index
    %34 = vector.load %arg11[%c0_26, %c0_27] : memref<32x32xf32, #tpu.memory_space<vmem>>, vector<32x32xf32>
    %cst_28 = arith.constant dense<0.000000e+00> : vector<8x32xf32>
    %35 = tpu.matmul %33, %34, %cst_28 {dimension_numbers = #tpu.dot_dimension_numbers<[1], [0], [0], [1], [0, 0, 1, 1], [], []>} : vector<8x32xf32>, vector<32x32xf32>, vector<8x32xf32> -> vector<8x32xf32>
    %36 = vector.shape_cast %35 : vector<8x32xf32> to vector<8x1x32xf32>
    %c0_29 = arith.constant 0 : index
    %c0_30 = arith.constant 0 : index
    %37 = vector.load %arg9[%c0_29, %c0_30] : memref<8x32xf32, #tpu.memory_space<vmem>>, vector<8x32xf32>
    %cst_31 = arith.constant 0.353553385 : f32
    %38 = vector.broadcast %cst_31 : f32 to vector<8x32xf32>
    %39 = arith.mulf %37, %38 : vector<8x32xf32>
    %40 = vector.shape_cast %39 : vector<8x32xf32> to vector<8x1x32xf32>
    %41 = arith.addf %36, %40 : vector<8x1x32xf32>
    %cst_32 = arith.constant dense<0xFF800000> : vector<1x32xf32>
    %42 = vector.multi_reduction <maximumf>, %41, %cst_32 [0] : vector<8x1x32xf32> to vector<1x32xf32>
    %43 = vector.shape_cast %42 : vector<1x32xf32> to vector<1x1x32xf32>
    %44 = vector.broadcast %43 : vector<1x1x32xf32> to vector<8x1x32xf32>
    %45 = arith.subf %41, %44 : vector<8x1x32xf32>
    %46 = math.exp %45 : vector<8x1x32xf32>
    %cst_33 = arith.constant dense<0.000000e+00> : vector<1x32xf32>
    %47 = vector.multi_reduction <add>, %46, %cst_33 [0] : vector<8x1x32xf32> to vector<1x32xf32>
    %48 = vector.shape_cast %47 : vector<1x32xf32> to vector<1x1x32xf32>
    %49 = tpu.reciprocal %48 : vector<1x1x32xf32> -> vector<1x1x32xf32>
    %50 = vector.broadcast %49 : vector<1x1x32xf32> to vector<8x1x32xf32>
    %51 = arith.mulf %46, %50 : vector<8x1x32xf32>
    %52 = vector.shape_cast %16 : vector<8x32xf32> to vector<8x1x32xf32>
    %53 = arith.mulf %51, %52 : vector<8x1x32xf32>
    %cst_34 = arith.constant dense<0.000000e+00> : vector<1x32xf32>
    %54 = vector.multi_reduction <add>, %53, %cst_34 [0] : vector<8x1x32xf32> to vector<1x32xf32>
    %c0_35 = arith.constant 0 : index
    %c0_36 = arith.constant 0 : index
    %55 = vector.load %arg12[%c0_35, %c0_36] : memref<32x32xf32, #tpu.memory_space<vmem>>, vector<32x32xf32>
    %cst_37 = arith.constant dense<0.000000e+00> : vector<1x32xf32>
    %56 = tpu.matmul %54, %55, %cst_37 {dimension_numbers = #tpu.dot_dimension_numbers<[1], [0], [0], [1], [0, 0, 1, 1], [], []>} : vector<1x32xf32>, vector<32x32xf32>, vector<1x32xf32> -> vector<1x32xf32>
    %c0_38 = arith.constant 0 : index
    %c0_39 = arith.constant 0 : index
    %57 = vector.load %arg13[%c0_38, %c0_39] : memref<1x32xf32, #tpu.memory_space<vmem>>, vector<1x32xf32>
    %58 = arith.addf %56, %57 : vector<1x32xf32>
    %c0_40 = arith.constant 0 : index
    %c0_41 = arith.constant 0 : index
    %c0_42 = arith.constant 0 : index
    %59 = vector.load %arg14[%c0_40, %c0_41, %c0_42] : memref<1x1x32xf32, #tpu.memory_space<vmem>>, vector<1x1x32xf32>
    %60 = vector.shape_cast %59 : vector<1x1x32xf32> to vector<1x32xf32>
    %61 = vector.shape_cast %58 : vector<1x32xf32> to vector<1x1x32xf32>
    tpu.vector_store %arg14[%c0_40, %c0_41, %c0_42], %61 {strides = array<i32>} : memref<1x1x32xf32, #tpu.memory_space<vmem>>, vector<1x1x32xf32>,
    return
  }
  func.func @transform_0(%arg0: i32) -> (i32, i32, i32) {
    %c0_i32 = arith.constant 0 : i32
    %c0_i32_0 = arith.constant 0 : i32
    %c0_i32_1 = arith.constant 0 : i32
    return %arg0, %c0_i32, %c0_i32_0 : i32, i32, i32
  }
  func.func @transform_1(%arg0: i32) -> (i32, i32, i32, i32) {
    %c0_i32 = arith.constant 0 : i32
    %c0_i32_0 = arith.constant 0 : i32
    %c0_i32_1 = arith.constant 0 : i32
    %c0_i32_2 = arith.constant 0 : i32
    return %c0_i32, %arg0, %c0_i32_0, %c0_i32_1 : i32, i32, i32, i32
  }
  func.func @transform_2(%arg0: i32) -> (i32, i32, i32, i32) {
    %c0_i32 = arith.constant 0 : i32
    %c0_i32_0 = arith.constant 0 : i32
    %c0_i32_1 = arith.constant 0 : i32
    %c0_i32_2 = arith.constant 0 : i32
    return %c0_i32, %arg0, %c0_i32_0, %c0_i32_1 : i32, i32, i32, i32
  }
  func.func @transform_3(%arg0: i32) -> (i32, i32) {
    %c0_i32 = arith.constant 0 : i32
    %c0_i32_0 = arith.constant 0 : i32
    %c0_i32_1 = arith.constant 0 : i32
    return %c0_i32, %c0_i32_0 : i32, i32
  }
  func.func @transform_4(%arg0: i32) -> (i32, i32) {
    %c0_i32 = arith.constant 0 : i32
    %c0_i32_0 = arith.constant 0 : i32
    %c0_i32_1 = arith.constant 0 : i32
    return %c0_i32, %c0_i32_0 : i32, i32
  }
  func.func @transform_5(%arg0: i32) -> (i32, i32) {
    %c0_i32 = arith.constant 0 : i32
    %c0_i32_0 = arith.constant 0 : i32
    %c0_i32_1 = arith.constant 0 : i32
    return %c0_i32, %c0_i32_0 : i32, i32
  }
  func.func @transform_6(%arg0: i32) -> (i32, i32) {
    %c0_i32 = arith.constant 0 : i32
    %c0_i32_0 = arith.constant 0 : i32
    %c0_i32_1 = arith.constant 0 : i32
    return %c0_i32, %c0_i32_0 : i32, i32
  }
  func.func @transform_7(%arg0: i32) -> (i32, i32) {
    %c0_i32 = arith.constant 0 : i32
    %c0_i32_0 = arith.constant 0 : i32
    %c0_i32_1 = arith.constant 0 : i32
    return %c0_i32, %c0_i32_0 : i32, i32
  }
  func.func @transform_8(%arg0: i32) -> (i32, i32) {
    %c0_i32 = arith.constant 0 : i32
    %c0_i32_0 = arith.constant 0 : i32
    %c0_i32_1 = arith.constant 0 : i32
    return %c0_i32, %c0_i32_0 : i32, i32
  }
  func.func @transform_9(%arg0: i32) -> (i32, i32) {
    %c0_i32 = arith.constant 0 : i32
    %c0_i32_0 = arith.constant 0 : i32
    %c0_i32_1 = arith.constant 0 : i32
    return %c0_i32, %c0_i32_0 : i32, i32
  }
  func.func @transform_10(%arg0: i32) -> (i32, i32) {
    %c0_i32 = arith.constant 0 : i32
    %c0_i32_0 = arith.constant 0 : i32
    %c0_i32_1 = arith.constant 0 : i32
    return %c0_i32, %c0_i32_0 : i32, i32
  }
  func.func @transform_11(%arg0: i32) -> (i32, i32) {
    %c0_i32 = arith.constant 0 : i32
    %c0_i32_0 = arith.constant 0 : i32
    %c0_i32_1 = arith.constant 0 : i32
    return %c0_i32, %c0_i32_0 : i32, i32
  }
  func.func @transform_12(%arg0: i32) -> (i32, i32) {
    %c0_i32 = arith.constant 0 : i32
    %c0_i32_0 = arith.constant 0 : i32
    %c0_i32_1 = arith.constant 0 : i32
    return %c0_i32, %c0_i32_0 : i32, i32
  }
  func.func @transform_13(%arg0: i32) -> (i32, i32, i32) {
    %c0_i32 = arith.constant 0 : i32
    %c0_i32_0 = arith.constant 0 : i32
    %c0_i32_1 = arith.constant 0 : i32
    return %arg0, %c0_i32, %c0_i32_0 : i32, i32, i32
  }
}

module attributes {stable_mosaic.version = 11 : i64} {
  func.func @_feedback_attention_kernel(%arg0: i32, %arg1: memref<1x1x32xf32, #tpu.memory_space<vmem>>, %arg2: memref<8x1x1x32xf32, #tpu.memory_space<vmem>>, %arg3: memref<8x1x1x32xf32, #tpu.memory_space<vmem>>, %arg4: memref<32x32xf32, #tpu.memory_space<vmem>>, %arg5: memref<32x32xf32, #tpu.memory_space<vmem>>, %arg6: memref<32x32xf32, #tpu.memory_space<vmem>>, %arg7: memref<1x32xf32, #tpu.memory_space<vmem>>, %arg8: memref<8x32xf32, #tpu.memory_space<vmem>>, %arg9: memref<8x32xf32, #tpu.memory_space<vmem>>, %arg10: memref<1x32xf32, #tpu.memory_space<vmem>>, %arg11: memref<32x32xf32, #tpu.memory_space<vmem>>, %arg12: memref<32x32xf32, #tpu.memory_space<vmem>>, %arg13: memref<1x32xf32, #tpu.memory_space<vmem>>, %arg14: memref<1x1x32xf32, #tpu.memory_space<vmem>>) attributes {dimension_semantics = [#tpu.dimension_semantics<parallel>], iteration_bounds = array<i64: 2>, scalar_prefetch = 0 : i64, scratch_operands = 0 : i64, tpu.core_type = #tpu.core_type<tc>, window_params = [{transform_indices = @transform_0, window_bounds = array<i64: 1, 1, 32>}, {transform_indices = @transform_1, window_bounds = array<i64: 8, 1, 1, 32>}, {transform_indices = @transform_2, window_bounds = array<i64: 8, 1, 1, 32>}, {pipeline_mode = #tpu.pipeline_mode<synchronous>, transform_indices = @transform_3, window_bounds = array<i64: 32, 32>}, {pipeline_mode = #tpu.pipeline_mode<synchronous>, transform_indices = @transform_4, window_bounds = array<i64: 32, 32>}, {pipeline_mode = #tpu.pipeline_mode<synchronous>, transform_indices = @transform_5, window_bounds = array<i64: 32, 32>}, {pipeline_mode = #tpu.pipeline_mode<synchronous>, transform_indices = @transform_6, window_bounds = array<i64: 1, 32>}, {pipeline_mode = #tpu.pipeline_mode<synchronous>, transform_indices = @transform_7, window_bounds = array<i64: 8, 32>}, {pipeline_mode = #tpu.pipeline_mode<synchronous>, transform_indices = @transform_8, window_bounds = array<i64: 8, 32>}, {pipeline_mode = #tpu.pipeline_mode<synchronous>, transform_indices = @transform_9, window_bounds = array<i64: 1, 32>}, {pipeline_mode = #tpu.pipeline_mode<synchronous>, transform_indices = @transform_10, window_bounds = array<i64: 32, 32>}, {pipeline_mode = #tpu.pipeline_mode<synchronous>, transform_indices = @transform_11, window_bounds = array<i64: 32, 32>}, {pipeline_mode = #tpu.pipeline_mode<synchronous>, transform_indices = @transform_12, window_bounds = array<i64: 1, 32>}, {transform_indices = @transform_13, window_bounds = array<i64: 1, 1, 32>}]} {
    %c0 = arith.constant 0 : index
    %c0_0 = arith.constant 0 : index
    %c0_1 = arith.constant 0 : index
    %0 = vector.load %arg1[%c0, %c0_0, %c0_1] : memref<1x1x32xf32, #tpu.memory_space<vmem>>, vector<1x1x32xf32>
    %1 = vector.shape_cast %0 : vector<1x1x32xf32> to vector<1x32xf32>
    %c0_2 = arith.constant 0 : index
    %c0_3 = arith.constant 0 : index
    %c0_4 = arith.constant 0 : index
    %c0_5 = arith.constant 0 : index
    %2 = vector.load %arg2[%c0_2, %c0_3, %c0_4, %c0_5] : memref<8x1x1x32xf32, #tpu.memory_space<vmem>>, vector<8x1x1x32xf32>
    %3 = vector.shape_cast %2 : vector<8x1x1x32xf32> to vector<8x1x32xf32>
    %4 = vector.shape_cast %3 : vector<8x1x32xf32> to vector<8x32xf32>
    %c0_6 = arith.constant 0 : index
    %c0_7 = arith.constant 0 : index
    %c0_8 = arith.constant 0 : index
    %c0_9 = arith.constant 0 : index
    %5 = vector.load %arg3[%c0_6, %c0_7, %c0_8, %c0_9] : memref<8x1x1x32xf32, #tpu.memory_space<vmem>>, vector<8x1x1x32xf32>
    %6 = vector.shape_cast %5 : vector<8x1x1x32xf32> to vector<8x1x32xf32>
    %7 = vector.shape_cast %6 : vector<8x1x32xf32> to vector<8x32xf32>
    %c0_10 = arith.constant 0 : index
    %c0_11 = arith.constant 0 : index
    %8 = vector.load %arg4[%c0_10, %c0_11] : memref<32x32xf32, #tpu.memory_space<vmem>>, vector<32x32xf32>
    %cst = arith.constant dense<0.000000e+00> : vector<1x32xf32>
    %9 = tpu.matmul %1, %8, %cst {dimension_numbers = #tpu.dot_dimension_numbers<[1], [0], [0], [1], [0, 0, 1, 1], [], []>} : vector<1x32xf32>, vector<32x32xf32>, vector<1x32xf32> -> vector<1x32xf32>
    %c0_12 = arith.constant 0 : index
    %c0_13 = arith.constant 0 : index
    %10 = vector.load %arg5[%c0_12, %c0_13] : memref<32x32xf32, #tpu.memory_space<vmem>>, vector<32x32xf32>
    %cst_14 = arith.constant dense<0.000000e+00> : vector<8x32xf32>
    %11 = tpu.matmul %4, %10, %cst_14 {dimension_numbers = #tpu.dot_dimension_numbers<[1], [0], [0], [1], [0, 0, 1, 1], [], []>} : vector<8x32xf32>, vector<32x32xf32>, vector<8x32xf32> -> vector<8x32xf32>
    %c0_15 = arith.constant 0 : index
    %c0_16 = arith.constant 0 : index
    %12 = vector.load %arg6[%c0_15, %c0_16] : memref<32x32xf32, #tpu.memory_space<vmem>>, vector<32x32xf32>
    %cst_17 = arith.constant dense<0.000000e+00> : vector<8x32xf32>
    %13 = tpu.matmul %7, %12, %cst_17 {dimension_numbers = #tpu.dot_dimension_numbers<[1], [0], [0], [1], [0, 0, 1, 1], [], []>} : vector<8x32xf32>, vector<32x32xf32>, vector<8x32xf32> -> vector<8x32xf32>
    %c0_18 = arith.constant 0 : index
    %c0_19 = arith.constant 0 : index
    %14 = vector.load %arg7[%c0_18, %c0_19] : memref<1x32xf32, #tpu.memory_space<vmem>>, vector<1x32xf32>
    %15 = vector.broadcast %14 : vector<1x32xf32> to vector<8x32xf32>
    %16 = arith.addf %13, %15 : vector<8x32xf32>
    %c0_20 = arith.constant 0 : index
    %c0_21 = arith.constant 0 : index
    %17 = vector.load %arg10[%c0_20, %c0_21] : memref<1x32xf32, #tpu.memory_space<vmem>>, vector<1x32xf32>
    %18 = arith.addf %9, %17 : vector<1x32xf32>
    %cst_22 = arith.constant 0.353553385 : f32
    %19 = vector.broadcast %cst_22 : f32 to vector<1x32xf32>
    %20 = arith.mulf %18, %19 : vector<1x32xf32>
    %cst_23 = arith.constant 0.353553385 : f32
    %21 = vector.broadcast %cst_23 : f32 to vector<1x32xf32>
    %22 = arith.mulf %9, %21 : vector<1x32xf32>
    %23 = vector.shape_cast %11 : vector<8x32xf32> to vector<8x1x32xf32>
    %c0_24 = arith.constant 0 : index
    %c0_25 = arith.constant 0 : index
    %24 = vector.load %arg8[%c0_24, %c0_25] : memref<8x32xf32, #tpu.memory_space<vmem>>, vector<8x32xf32>
    %25 = vector.shape_cast %20 : vector<1x32xf32> to vector<1x1x32xf32>
    %26 = vector.broadcast %25 : vector<1x1x32xf32> to vector<8x1x32xf32>
    %27 = arith.mulf %23, %26 : vector<8x1x32xf32>
    %28 = vector.shape_cast %24 : vector<8x32xf32> to vector<8x1x32xf32>
    %29 = vector.shape_cast %22 : vector<1x32xf32> to vector<1x1x32xf32>
    %30 = vector.broadcast %29 : vector<1x1x32xf32> to vector<8x1x32xf32>
    %31 = arith.mulf %28, %30 : vector<8x1x32xf32>
    %32 = arith.addf %27, %31 : vector<8x1x32xf32>
    %33 = vector.shape_cast %32 : vector<8x1x32xf32> to vector<8x32xf32>
    %c0_26 = arith.constant 0 : index
    %c0_27 = arith.constant 0 : index
    %34 = vector.load %arg11[%c0_26, %c0_27] : memref<32x32xf32, #tpu.memory_space<vmem>>, vector<32x32xf32>
    %cst_28 = arith.constant dense<0.000000e+00> : vector<8x32xf32>
    %35 = tpu.matmul %33, %34, %cst_28 {dimension_numbers = #tpu.dot_dimension_numbers<[1], [0], [0], [1], [0, 0, 1, 1], [], []>} : vector<8x32xf32>, vector<32x32xf32>, vector<8x32xf32> -> vector<8x32xf32>
    %36 = vector.shape_cast %35 : vector<8x32xf32> to vector<8x1x32xf32>
    %c0_29 = arith.constant 0 : index
    %c0_30 = arith.constant 0 : index
    %37 = vector.load %arg9[%c0_29, %c0_30] : memref<8x32xf32, #tpu.memory_space<vmem>>, vector<8x32xf32>
    %cst_31 = arith.constant 0.353553385 : f32
    %38 = vector.broadcast %cst_31 : f32 to vector<8x32xf32>
    %39 = arith.mulf %37, %38 : vector<8x32xf32>
    %40 = vector.shape_cast %39 : vector<8x32xf32> to vector<8x1x32xf32>
    %41 = arith.addf %36, %40 : vector<8x1x32xf32>
    %cst_32 = arith.constant dense<0xFF800000> : vector<1x32xf32>
    %42 = vector.multi_reduction <maximumf>, %41, %cst_32 [0] : vector<8x1x32xf32> to vector<1x32xf32>
    %43 = vector.shape_cast %42 : vector<1x32xf32> to vector<1x1x32xf32>
    %44 = vector.broadcast %43 : vector<1x1x32xf32> to vector<8x1x32xf32>
    %45 = arith.subf %41, %44 : vector<8x1x32xf32>
    %46 = math.exp %45 : vector<8x1x32xf32>
    %cst_33 = arith.constant dense<0.000000e+00> : vector<1x32xf32>
    %47 = vector.multi_reduction <add>, %46, %cst_33 [0] : vector<8x1x32xf32> to vector<1x32xf32>
    %48 = vector.shape_cast %47 : vector<1x32xf32> to vector<1x1x32xf32>
    %49 = tpu.reciprocal %48 : vector<1x1x32xf32> -> vector<1x1x32xf32>
    %50 = vector.broadcast %49 : vector<1x1x32xf32> to vector<8x1x32xf32>
    %51 = arith.mulf %46, %50 : vector<8x1x32xf32>
    %52 = vector.shape_cast %16 : vector<8x32xf32> to vector<8x1x32xf32>
    %53 = arith.mulf %51, %52 : vector<8x1x32xf32>
    %cst_34 = arith.constant dense<0.000000e+00> : vector<1x32xf32>
    %54 = vector.multi_reduction <add>, %53, %cst_34 [0] : vector<8x1x32xf32> to vector<1x32xf32>
    %c0_35 = arith.constant 0 : index
    %c0_36 = arith.constant 0 : index
    %55 = vector.load %arg12[%c0_35, %c0_36] : memref<32x32xf32, #tpu.memory_space<vmem>>, vector<32x32xf32>
    %cst_37 = arith.constant dense<0.000000e+00> : vector<1x32xf32>
    %56 = tpu.matmul %54, %55, %cst_37 {dimension_numbers = #tpu.dot_dimension_numbers<[1], [0], [0], [1], [0, 0, 1, 1], [], []>} : vector<1x32xf32>, vector<32x32xf32>, vector<1x32xf32> -> vector<1x32xf32>
    %c0_38 = arith.constant 0 : index
    %c0_39 = arith.constant 0 : index
    %57 = vector.load %arg13[%c0_38, %c0_39] : memref<1x32xf32, #tpu.memory_space<vmem>>, vector<1x32xf32>
    %58 = arith.addf %56, %57 : vector<1x32xf32>
    %c0_40 = arith.constant 0 : index
    %c0_41 = arith.constant 0 : index
    %c0_42 = arith.constant 0 : index
    %59 = vector.load %arg14[%c0_40, %c0_41, %c0_42] : memref<1x1x32xf32, #tpu.memory_space<vmem>>, vector<1x1x32xf32>
    %60 = vector.shape_cast %59 : vector<1x1x32xf32> to vector<1x32xf32>
    %61 = vector.shape_cast %58 : vector<1x32xf32> to vector<1x1x32xf32>
    tpu.vector_store %arg14[%c0_40, %c0_41, %c0_42], %61 {strides = array<i32>} : memref<1x1x32xf32, #tpu.memory_space<vmem>>, vector<1x1x32xf32>,
    return
  }
  func.func @transform_0(%arg0: i32) -> (i32, i32, i32) {
    %c0_i32 = arith.constant 0 : i32
    %c0_i32_0 = arith.constant 0 : i32
    %c0_i32_1 = arith.constant 0 : i32
    return %arg0, %c0_i32, %c0_i32_0 : i32, i32, i32
  }
  func.func @transform_1(%arg0: i32) -> (i32, i32, i32, i32) {
    %c0_i32 = arith.constant 0 : i32
    %c0_i32_0 = arith.constant 0 : i32
    %c0_i32_1 = arith.constant 0 : i32
    %c0_i32_2 = arith.constant 0 : i32
    return %c0_i32, %arg0, %c0_i32_0, %c0_i32_1 : i32, i32, i32, i32
  }
  func.func @transform_2(%arg0: i32) -> (i32, i32, i32, i32) {
    %c0_i32 = arith.constant 0 : i32
    %c0_i32_0 = arith.constant 0 : i32
    %c0_i32_1 = arith.constant 0 : i32
    %c0_i32_2 = arith.constant 0 : i32
    return %c0_i32, %arg0, %c0_i32_0, %c0_i32_1 : i32, i32, i32, i32
  }
  func.func @transform_3(%arg0: i32) -> (i32, i32) {
    %c0_i32 = arith.constant 0 : i32
    %c0_i32_0 = arith.constant 0 : i32
    %c0_i32_1 = arith.constant 0 : i32
    return %c0_i32, %c0_i32_0 : i32, i32
  }
  func.func @transform_4(%arg0: i32) -> (i32, i32) {
    %c0_i32 = arith.constant 0 : i32
    %c0_i32_0 = arith.constant 0 : i32
    %c0_i32_1 = arith.constant 0 : i32
    return %c0_i32, %c0_i32_0 : i32, i32
  }
  func.func @transform_5(%arg0: i32) -> (i32, i32) {
    %c0_i32 = arith.constant 0 : i32
    %c0_i32_0 = arith.constant 0 : i32
    %c0_i32_1 = arith.constant 0 : i32
    return %c0_i32, %c0_i32_0 : i32, i32
  }
  func.func @transform_6(%arg0: i32) -> (i32, i32) {
    %c0_i32 = arith.constant 0 : i32
    %c0_i32_0 = arith.constant 0 : i32
    %c0_i32_1 = arith.constant 0 : i32
    return %c0_i32, %c0_i32_0 : i32, i32
  }
  func.func @transform_7(%arg0: i32) -> (i32, i32) {
    %c0_i32 = arith.constant 0 : i32
    %c0_i32_0 = arith.constant 0 : i32
    %c0_i32_1 = arith.constant 0 : i32
    return %c0_i32, %c0_i32_0 : i32, i32
  }
  func.func @transform_8(%arg0: i32) -> (i32, i32) {
    %c0_i32 = arith.constant 0 : i32
    %c0_i32_0 = arith.constant 0 : i32
    %c0_i32_1 = arith.constant 0 : i32
    return %c0_i32, %c0_i32_0 : i32, i32
  }
  func.func @transform_9(%arg0: i32) -> (i32, i32) {
    %c0_i32 = arith.constant 0 : i32
    %c0_i32_0 = arith.constant 0 : i32
    %c0_i32_1 = arith.constant 0 : i32
    return %c0_i32, %c0_i32_0 : i32, i32
  }
  func.func @transform_10(%arg0: i32) -> (i32, i32) {
    %c0_i32 = arith.constant 0 : i32
    %c0_i32_0 = arith.constant 0 : i32
    %c0_i32_1 = arith.constant 0 : i32
    return %c0_i32, %c0_i32_0 : i32, i32
  }
  func.func @transform_11(%arg0: i32) -> (i32, i32) {
    %c0_i32 = arith.constant 0 : i32
    %c0_i32_0 = arith.constant 0 : i32
    %c0_i32_1 = arith.constant 0 : i32
    return %c0_i32, %c0_i32_0 : i32, i32
  }
  func.func @transform_12(%arg0: i32) -> (i32, i32) {
    %c0_i32 = arith.constant 0 : i32
    %c0_i32_0 = arith.constant 0 : i32
    %c0_i32_1 = arith.constant 0 : i32
    return %c0_i32, %c0_i32_0 : i32, i32
  }
  func.func @transform_13(%arg0: i32) -> (i32, i32, i32) {
    %c0_i32 = arith.constant 0 : i32
    %c0_i32_0 = arith.constant 0 : i32
    %c0_i32_1 = arith.constant 0 : i32
    return %arg0, %c0_i32, %c0_i32_0 : i32, i32, i32
  }
}

</mosaic_0001>

<bundles_post_ra>
// kernel: tpu_custom_call.1
= control target key start
LH: loop header
LB: loop body
LE: loop exit
PB: predicated region body
PF: predicated region fallthrough
CT: control target
= control target key end

     0   :  { %s3067_s0 = inlined_call_operand.hbm [shape: f32[2,1,32], index: 0, kind: input, shape index: {}]   ;;  %s3068_s1 = inlined_call_operand.hbm [shape: f32[8,2,1,32], index: 1, kind: input, shape index: {}]   ;;  %s3069_s2 = inlined_call_operand.hbm [shape: f32[8,2,1,32], index: 2, kind: input, shape index: {}]   ;;  %s3070_s3 = inlined_call_operand.hbm [shape: f32[32,32], index: 3, kind: input, shape index: {}]   ;;  %s3071_s4 = inlined_call_operand.hbm [shape: f32[32,32], index: 4, kind: input, shape index: {}]   ;;  %s3072_s5 = inlined_call_operand.hbm [shape: f32[32,32], index: 5, kind: input, shape index: {}]   ;;  %s3073_s6 = inlined_call_operand.vmem [shape: f32[1,32], index: 6, kind: input, shape index: {}]   ;;  %s3074_s7 = inlined_call_operand.hbm [shape: f32[8,32], index: 7, kind: input, shape index: {}]   ;;  %s3075_s8 = inlined_call_operand.hbm [shape: f32[8,32], index: 8, kind: input, shape index: {}]   ;;  %s3076_s9 = inlined_call_operand.vmem [shape: f32[1,32], index: 9, kind: input, shape index: {}]   ;;  %s3077_s10 = inlined_call_operand.vmem [shape: f32[32,32], index: 10, kind: input, shape index: {}]   ;;  %s3078_s11 = inlined_call_operand.hbm [shape: f32[32,32], index: 11, kind: input, shape index: {}]   ;;  %s3079_s12 = inlined_call_operand.vmem [shape: f32[1,32], index: 12, kind: input, shape index: {}]   ;;  %s3080_s13 = inlined_call_operand.hbm [shape: f32[2,1,32], index: 13, kind: output, shape index: {}]  }
   0x1   :  { %3111 = sst [smem:[#allocation31_spill]] %s3068_s1 }
   0x2   :  { %3112 = sst [smem:[#allocation32_spill]] %s3070_s3 }
   0x3   :  { %3113 = sst [smem:[#allocation33_spill]] %s3072_s5 }
   0x4   :  { %3114 = sst [smem:[#allocation34_spill]] %s3073_s6 }
   0x5   :  { %3115 = sst [smem:[#allocation35_spill]] %s3075_s8 }
   0x6   :  { %3116 = sst [smem:[#allocation36_spill]] %s3076_s9 }
   0x7   :  { %3117 = sst [smem:[#allocation37_spill]] %s3077_s10 }
   0x8   :  { %3118 = sst [smem:[#allocation38_spill]] %s3079_s12 }
   0x9   :  { %3119 = sst [smem:[#allocation39_spill]] %s3080_s13 }
   0xa   :  { %18 = vsyncpa [#allocation3], 0 }
   0xb   :  { %20 = vsyncpa [#allocation3 + $0x1], 0 }
   0xc   :  { %21 = vsyncpa [#allocation6], 0 }
   0xd   :  { %23 = vsyncpa [#allocation6 + $0x1], 0 }
   0xe   :  { %24 = vsyncpa [#allocation9], 0 }
   0xf   :  { %25 = vsyncpa [#allocation12], 0 }
  0x10   :  { %26 = vsyncpa [#allocation15], 0 }
  0x11   :  { %27 = vsyncpa [#allocation4], 0 }
  0x12   :  { %29 = vsyncpa [#allocation4 + $0x1], 0  ;;  %s2504_s25 = smov 0   ;;  %s2506_s26 = smov 0  }
  0x13   :  { %s2508_s27 = smov 0   ;;  %s2510_s28 = smov 0  }
  0x14 LB: > { %3120 = sst [smem:[#allocation24_spill]] %s2401_s25  ;;  %s2415_s29 = smov [#allocation8]   ;;  %s2413_s28 = sphi %s2510_s28, %s3169_s28   ;;  %s2409_s27 = sphi %s2508_s27, %s3171_s27   ;;  %s2405_s26 = sphi %s2506_s26, %s3173_s26   ;;  %s2401_s25 = sphi %s2504_s25, %s3172_s25  }
  0x15   : > { %3121 = sst [smem:[#allocation25_spill]] %s2409_s27  ;;  %s366_s30 = sshll.u32 %s2415_s29, 4  ;;  %s2530_s30 = int_to_ptr.vmem [resolvable:$true] %s366_s30 }
  0x16   : > { %3122 = sst [smem:[#allocation26_spill]] %s2413_s28  ;;  %s2525_s14 = sadd.s32 4294967295, %s2413_s28  }
  0x17   : > { %p1787_p0 = scmp.ge.s32.totalorder %s2413_s28, 1  ;;  %p3090_p1 = scmp.eq.s32.totalorder %s2525_s14, 0 }
  0x18   : > { %p354_p2 = scmp.lt.s32.totalorder %s2413_s28, 3  ;;  %s2416_s16 = smov [#allocation11]  }
  0x19   : > { %s392_s17 = sshll.u32 %s2416_s16, 4  ;;  %s2417_s19 = smov [#allocation14]   ;;  %s2545_s17 = int_to_ptr.vmem [resolvable:$true] %s392_s17 }
  0x1a   : > { %p2532_p3 = pnand %p1787_p0, %p354_p2  ;;  %s420_s20 = sshll.u32 %s2417_s19, 4  ;;  %s2547_s20 = int_to_ptr.vmem [resolvable:$true] %s420_s20 }
  0x1b   : > { %s3125_s3 = sld [smem:[#allocation32_spill]] }
  0x1c   : > { %s3123_s15 = scalar_select %p2532_p3, 1, 0 }
  0x1d   : > { %p1960_p5 = pneg %p2532_p3 }
  0x1f   : > { %p2541_p6 = pnand %p1960_p5, %p3090_p1 }
  0x21   : > { %s3124_s18 = scalar_select %p2541_p6, 1, 0 }
  0x22   : > { %s2073_s23 = scalar_lea.hbm %s3125_s3, 512  ;;  %p2557_p8 = pneg %p2541_p6 }
  0x23   : > { %p2074_p7 = scmp.ne.s32.totalorder %s3125_s3, %s2073_s23  ;;  %p2080_p11 = scmp.lt.u32.totalorder %s2073_s23, %s3125_s3 }
  0x24   : > { %s3126_s16 = scalar_select %p2557_p8, 1, 0 }
  0x25   : > { %p2076_p9 = pnand %p2557_p8, %p2074_p7 }
  0x27   : > { %p2077_p10 = pneg %p2076_p9 }
  0x29   : > { %p2082_p12 = pnand %p2080_p11, %p2077_p10 }
  0x2b   : > { %2085 = shalt.err (!%p2082_p12)
}
  0x2c   : > { %s2086_s21 = scalar_lea.vmem %s2530_s30, 512  ;;  %p2094_p5 = scmp.lt.s32.totalorder %s2530_s30, %s2530_s30 }
  0x2d   : > { %p2087_p13 = scmp.ne.s32.totalorder %s2530_s30, %s2086_s21  ;;  %p2095_p4 = scmp.lt.s32.totalorder %s2086_s21, %s2086_s21 }
  0x2f   : > { %p2089_p0 = pnand %p2087_p13, %p2557_p8  ;;  %p2096_p7 = por %p2095_p4, %p2094_p5 }
  0x31   : > { %p2090_p2 = pneg %p2089_p0 }
  0x33   : > { %p2097_p9 = pnand %p2096_p7, %p2090_p2 }
  0x35   : > { %2100 = shalt.err (!%p2097_p9)
}
  0x36   : > { %s3084_s22 = smov 128   ;;  %s3086_s13 = smov 8  }
  0x37   : > { %1963 = dma.hbm_to_vmem [thread:$0]  (!%p2541_p6), %s3125_s3, 512, %s2530_s30, [#allocation9], %s3084_s22, %s3084_s22, %s3086_s13  }
  0x38   : > { %s3127_s5 = sld [smem:[#allocation33_spill]] }
  0x3e   : > { %s2101_s21 = scalar_lea.hbm %s3127_s5, 512 }
  0x3f   : > { %p2102_p4 = scmp.ne.s32.totalorder %s3127_s5, %s2101_s21  ;;  %p2108_p12 = scmp.lt.u32.totalorder %s2101_s21, %s3127_s5 }
  0x41   : > { %p2104_p10 = pnand %p2102_p4, %p2557_p8 }
  0x43   : > { %p2105_p11 = pneg %p2104_p10 }
  0x45   : > { %p2110_p13 = pnand %p2108_p12, %p2105_p11 }
  0x47   : > { %2113 = shalt.err (!%p2110_p13)
}
  0x48   : > { %s2114_s30 = scalar_lea.vmem %s2545_s17, 512  ;;  %p2122_p7 = scmp.lt.s32.totalorder %s2545_s17, %s2545_s17 }
  0x49   : > { %p2115_p0 = scmp.ne.s32.totalorder %s2545_s17, %s2114_s30  ;;  %p2123_p9 = scmp.lt.s32.totalorder %s2114_s30, %s2114_s30 }
  0x4b   : > { %p2117_p2 = pnand %p2115_p0, %p2557_p8  ;;  %p2124_p4 = por %p2123_p9, %p2122_p7 }
  0x4d   : > { %p2118_p5 = pneg %p2117_p2 }
  0x4f   : > { %p2125_p10 = pnand %p2124_p4, %p2118_p5 }
  0x51   : > { %2128 = shalt.err (!%p2125_p10)
}
  0x52   : > { %1969 = dma.hbm_to_vmem [thread:$0]  (!%p2541_p6), %s3127_s5, 512, %s2545_s17, [#allocation12], %s3084_s22, %s3084_s22, %s3086_s13  }
  0x53   : > { %s3128_s8 = sld [smem:[#allocation35_spill]] }
  0x59   : > { %s2129_s23 = scalar_lea.hbm %s3128_s8, 128 }
  0x5a   : > { %p2130_p11 = scmp.ne.s32.totalorder %s3128_s8, %s2129_s23  ;;  %p2136_p0 = scmp.lt.u32.totalorder %s2129_s23, %s3128_s8 }
  0x5c   : > { %p2132_p12 = pnand %p2130_p11, %p2557_p8 }
  0x5e   : > { %p2133_p13 = pneg %p2132_p12 }
  0x60   : > { %p2138_p2 = pnand %p2136_p0, %p2133_p13 }
  0x62   : > { %2141 = shalt.err (!%p2138_p2)
}
  0x63   : > { %s2142_s17 = scalar_lea.vmem %s2547_s20, 128  ;;  %p2150_p4 = scmp.lt.s32.totalorder %s2547_s20, %s2547_s20 }
  0x64   : > { %p2143_p5 = scmp.ne.s32.totalorder %s2547_s20, %s2142_s17  ;;  %p2151_p10 = scmp.lt.s32.totalorder %s2142_s17, %s2142_s17 }
  0x66   : > { %p2145_p7 = pnand %p2143_p5, %p2557_p8  ;;  %p2152_p11 = por %p2151_p10, %p2150_p4 }
  0x68   : > { %p2146_p9 = pneg %p2145_p7 }
  0x6a   : > { %p2153_p12 = pnand %p2152_p11, %p2146_p9 }
  0x6c   : > { %2156 = shalt.err (!%p2153_p12)
}
  0x6d   : > { %1975 = dma.hbm_to_vmem [thread:$0]  (!%p2541_p6), %s3128_s8, 128, %s2547_s20, [#allocation15]  }
  0x6e   : > { %s1786_s9 = sadd.s32 4294967294, %s2413_s28   ;;  %s2632_s10 = sadd.s32 1, %s2413_s28  }
  0x6f   : > { %3129 = sst [smem:[#allocation27_spill]] %s2632_s10  ;;  %s42_s12 = sadd.s32 1, %s2409_s27 }
  0x70   : > { %s39_s23 = ssub.s32 %s2413_s28, %s2632_s10  ;;  %p49_p13 = scmp.ne.s32.totalorder %s2409_s27, %s2405_s26 }
  0x71   : > { %p40_p0 = scmp.eq.s32.totalorder %s39_s23, 0  ;;  %p50_p2 = scmp.eq.s32.totalorder %s2413_s28, 0 }
  0x72   : > { %p55_p5 = scmp.ne.s32.totalorder %s2405_s26, %s2401_s25  ;;  %p341_p7 = scmp.eq.s32.totalorder %s2525_s14, 1 }
  0x73   : > { %s2644_s24 = scalar_select %p40_p0, %s2409_s27, %s42_s12  }
  0x74   : > { %p51_p9 = por %p50_p2, %p49_p13  ;;  %p2648_p4 = por %p3090_p1, %p55_p5 }
  0x75   : > { %3130 = sst [smem:[#allocation28_spill]] %s2644_s24  ;;  %p2652_p10 = por %p341_p7, %p49_p13 }
  0x76   : > { %s3131_s20 = scalar_select %p2648_p4, 1, 0 }
  0x77   : > { %s3132_s29 = scalar_select %p2652_p10, 1, 0 }
  0x78   : > { %p347_p11 = scmp.eq.s32.totalorder %s1786_s9, 1  ;;  %p1999_p12 = scmp.lt.s32.totalorder %s2413_s28, 2 }
  0x79   : > { %3133 = sst [smem:[#allocation29_spill]] %s3132_s29  ;;  %s2658_s19 = sand.u32 1, %s2409_s27  }
  0x7a   : > { %p2660_p3 = por %p347_p11, %p55_p5  ;;  %s2665_s17 = sshll.u32 %s2413_s28, 4 }
  0x7b   : > { %p2667_p0 = pnand %p1999_p12, %p51_p9  ;;  %s470_s6 = sand.u32 1, %s2413_s28  }
  0x7c   : > { %s3134_s21 = scalar_select %p2660_p3, 1, 0 }
  0x7d   : > { %s3136_s30 = scalar_select %p2667_p0, 1, 0 }
  0x7e   : > { %3135 = sst [smem:[#allocation30_spill]] %s3134_s21  ;;  %s3088_s12 = sshll.u32 %s2658_s19, 3 }
  0x7f   : > { %s3137_s1 = sld [smem:[#allocation31_spill]]  ;;  %s474_s13 = scalar_lea.vmem [#allocation5], %s3088_s12 }
  0x80   : > { %s480_s3 = sshll.u32 %s474_s13, 4  ;;  %s2683_s5 = scalar_lea.sflag [#allocation6], %s470_s6  ;;  %s2681_s3 = int_to_ptr.vmem [resolvable:$true] %s480_s3 }
  0x81   : > { %p2689_p2 = pneg %p2667_p0 }
  0x83   : > { %s3138_s24 = scalar_select %p2689_p2, 1, 0 }
  0x85   : > { %s2677_s22 = scalar_lea.hbm %s3137_s1, %s2665_s17  ;;  %s2162_s12 = scalar_lea.hbm %s3137_s1, 256 }
  0x86   : > { %s2157_s8 = scalar_lea.hbm %s2677_s22, 128  ;;  %p2163_p9 = scmp.lt.u32.totalorder %s2677_s22, %s3137_s1 }
  0x87   : > { %p2158_p13 = scmp.ne.s32.totalorder %s2677_s22, %s2157_s8  ;;  %p2164_p11 = scmp.lt.u32.totalorder %s2162_s12, %s2157_s8 }
  0x88   : > { %p2166_p1 = scmp.lt.u32.totalorder %s2157_s8, %s2677_s22 }
  0x89   : > { %p2160_p5 = pnand %p2689_p2, %p2158_p13  ;;  %p2165_p12 = por %p2164_p11, %p2163_p9 }
  0x8b   : > { %p2161_p7 = pneg %p2160_p5  ;;  %p2167_p3 = por %p2166_p1, %p2165_p12 }
  0x8d   : > { %p2168_p10 = pnand %p2167_p3, %p2161_p7 }
  0x8f   : > { %2171 = shalt.err (!%p2168_p10)
}
  0x90   : > { %s2172_s6 = scalar_lea.vmem %s2681_s3, 128  ;;  %s2420_s9 = smov [#allocation5]  }
  0x91   : > { %p2173_p13 = scmp.ne.s32.totalorder %s2681_s3, %s2172_s6  ;;  %s2177_s23 = sshll.u32 %s2420_s9, 4  ;;  %s2178_s23 = int_to_ptr.vmem [resolvable:$false] %s2177_s23 }
  0x92   : > { %s2179_s27 = scalar_lea.vmem %s2178_s23, 256  ;;  %p2180_p6 = scmp.lt.s32.totalorder %s2681_s3, %s2178_s23 }
  0x93   : > { %p2175_p5 = pnand %p2173_p13, %p2689_p2  ;;  %p2181_p8 = scmp.lt.s32.totalorder %s2179_s27, %s2172_s6 }
  0x95   : > { %p2176_p4 = pneg %p2175_p5  ;;  %p2182_p9 = por %p2181_p8, %p2180_p6 }
  0x97   : > { %p2183_p11 = pnand %p2182_p9, %p2176_p4 }
  0x99   : > { %2186 = shalt.err (!%p2183_p11)
}
  0x9a   : > { %s3106_s8 = smov 32   ;;  %s3107_s12 = smov 16  }
  0x9b   : > { %s3108_s13 = smov 1   ;;  %s3139_s9 = sshll.u32 %s2658_s19, 3 }
  0x9c   : > { %1985 = dma.hbm_to_vmem [thread:$0]  (!%p2667_p0), %s2677_s22, 128, %s2681_s3, %s2683_s5, %s3106_s8, %s3107_s12, %s3108_s13  }
  0x9d   : > { %s494_s23 = scalar_lea.vmem [#allocation7], %s3139_s9  ;;  %s2424_s27 = smov [#allocation10]  }
  0x9e   : > { %s500_s6 = sshll.u32 %s494_s23, 4  ;;  %s379_s1 = sshll.u32 %s2424_s27, 4  ;;  %s2718_s6 = int_to_ptr.vmem [resolvable:$true] %s500_s6  ;;  %s380_s1 = int_to_ptr.vmem [resolvable:$true] %s379_s1 }
  0x9f   : > { %s2187_s21 = scalar_lea.hbm %s3071_s4, 512  ;;  %p3140_p3 = scmp.ne.s32.totalorder %s3126_s16, 0 }
  0xa0   : > { %p2188_p1 = scmp.ne.s32.totalorder %s3071_s4, %s2187_s21  ;;  %p2194_p4 = scmp.lt.u32.totalorder %s2187_s21, %s3071_s4 }
  0xa2   : > { %p2190_p6 = pnand %p2188_p1, %p3140_p3 }
  0xa4   : > { %p2191_p8 = pneg %p2190_p6 }
  0xa6   : > { %p2196_p10 = pnand %p2194_p4, %p2191_p8 }
  0xa8   : > { %2199 = shalt.err (!%p2196_p10)
}
  0xa9   : > { %s2200_s9 = scalar_lea.vmem %s380_s1, 512  ;;  %p2208_p5 = scmp.lt.s32.totalorder %s380_s1, %s380_s1 }
  0xaa   : > { %p2201_p7 = scmp.ne.s32.totalorder %s380_s1, %s2200_s9  ;;  %p2209_p9 = scmp.lt.s32.totalorder %s2200_s9, %s2200_s9 }
  0xac   : > { %p2203_p12 = pnand %p2201_p7, %p3140_p3  ;;  %p2210_p11 = por %p2209_p9, %p2208_p5 }
  0xae   : > { %p2204_p13 = pneg %p2203_p12 }
  0xb0   : > { %p2211_p0 = pnand %p2210_p11, %p2204_p13 }
  0xb2   : > { %2214 = shalt.err (!%p2211_p0)
}
  0xb3   : > { %p3141_p1 = scmp.ne.s32.totalorder %s3124_s18, 0  ;;  %s3142_s25 = smov 8  }
  0xb4   : > { %s3143_s28 = smov 128   ;;  %s2425_s21 = smov [#allocation13]  }
  0xb5   : > { %1966 = dma.hbm_to_vmem [thread:$0]  (!%p3141_p1), %s3071_s4, 512, %s380_s1, [#allocation9], %s3143_s28, %s3143_s28, %s3142_s25  }
  0xb6   : > { %s409_s23 = sshll.u32 %s2425_s21, 4  ;;  %s2426_s27 = smov [#allocation16]   ;;  %s410_s23 = int_to_ptr.vmem [resolvable:$true] %s409_s23 }
  0xb7   : > { %s436_s3 = sshll.u32 %s2426_s27, 4  ;;  %s2215_s8 = scalar_lea.hbm %s3074_s7, 128  ;;  %s2741_s3 = int_to_ptr.vmem [resolvable:$true] %s436_s3 }
  0xb8   : > { %p2216_p0 = scmp.ne.s32.totalorder %s3074_s7, %s2215_s8  ;;  %p2222_p4 = scmp.lt.u32.totalorder %s2215_s8, %s3074_s7 }
  0xba   : > { %p2218_p6 = pnand %p2216_p0, %p3140_p3 }
  0xbc   : > { %p2219_p8 = pneg %p2218_p6 }
  0xbe   : > { %p2224_p10 = pnand %p2222_p4, %p2219_p8 }
  0xc0   : > { %2227 = shalt.err (!%p2224_p10)
}
  0xc1   : > { %s2228_s29 = scalar_lea.vmem %s410_s23, 128  ;;  %p2236_p5 = scmp.lt.s32.totalorder %s410_s23, %s410_s23 }
  0xc2   : > { %p2229_p7 = scmp.ne.s32.totalorder %s410_s23, %s2228_s29  ;;  %p2237_p9 = scmp.lt.s32.totalorder %s2228_s29, %s2228_s29 }
  0xc4   : > { %p2231_p12 = pnand %p2229_p7, %p3140_p3  ;;  %p2238_p11 = por %p2237_p9, %p2236_p5 }
  0xc6   : > { %p2232_p13 = pneg %p2231_p12 }
  0xc8   : > { %p2239_p2 = pnand %p2238_p11, %p2232_p13 }
  0xca   : > { %2242 = shalt.err (!%p2239_p2)
}
  0xcb   : > { %1972 = dma.hbm_to_vmem [thread:$0]  (!%p3141_p1), %s3074_s7, 128, %s410_s23, [#allocation12]  }
  0xcc   : > { %s2243_s27 = scalar_lea.hbm %s3078_s11, 512 }
  0xcd   : > { %p2244_p0 = scmp.ne.s32.totalorder %s3078_s11, %s2243_s27  ;;  %p2250_p2 = scmp.lt.u32.totalorder %s2243_s27, %s3078_s11 }
  0xcf   : > { %p2246_p6 = pnand %p2244_p0, %p3140_p3 }
  0xd1   : > { %p2247_p8 = pneg %p2246_p6 }
  0xd3   : > { %p2252_p4 = pnand %p2250_p2, %p2247_p8 }
  0xd5   : > { %2255 = shalt.err (!%p2252_p4)
}
  0xd6   : > { %s2256_s23 = scalar_lea.vmem %s2741_s3, 512  ;;  %p2264_p13 = scmp.lt.s32.totalorder %s2741_s3, %s2741_s3 }
  0xd7   : > { %p2257_p10 = scmp.ne.s32.totalorder %s2741_s3, %s2256_s23  ;;  %p2265_p5 = scmp.lt.s32.totalorder %s2256_s23, %s2256_s23 }
  0xd9   : > { %p2259_p7 = pnand %p2257_p10, %p3140_p3  ;;  %p2266_p9 = por %p2265_p5, %p2264_p13 }
  0xdb   : > { %p2260_p12 = pneg %p2259_p7 }
  0xdd   : > { %p2267_p11 = pnand %p2266_p9, %p2260_p12 }
  0xdf   : > { %2270 = shalt.err (!%p2267_p11)
}
  0xe0   : > { %1978 = dma.hbm_to_vmem [thread:$0]  (!%p3141_p1), %s3078_s11, 512, %s2741_s3, [#allocation15], %s3143_s28, %s3143_s28, %s3142_s25  }
  0xe1   : > { %s2791_s8 = scalar_lea.hbm %s3067_s0, %s2665_s17  ;;  %s456_s18 = scalar_lea.vmem [#allocation2], %s2658_s19 }
  0xe2   : > { %s463_s21 = sshll.u32 %s456_s18, 4  ;;  %s2800_s9 = scalar_lea.hbm %s3069_s2, %s2665_s17  ;;  %s2794_s21 = int_to_ptr.vmem [resolvable:$true] %s463_s21 }
  0xe3   : > { %s454_s10 = scalar_lea.sflag [#allocation3], %s2658_s19  ;;  %s2271_s25 = scalar_lea.hbm %s2791_s8, 16 }
  0xe4   : > { %p2272_p3 = scmp.ne.s32.totalorder %s2791_s8, %s2271_s25  ;;  %p3144_p1 = scmp.ne.s32.totalorder %s3138_s24, 0 }
  0xe5   : > { %s2276_s1 = scalar_lea.hbm %s3067_s0, 32  ;;  %p2277_p8 = scmp.lt.u32.totalorder %s2791_s8, %s3067_s0 }
  0xe6   : > { %p2274_p0 = pnand %p2272_p3, %p3144_p1  ;;  %p2278_p2 = scmp.lt.u32.totalorder %s2276_s1, %s2271_s25 }
  0xe7   : > { %p2280_p10 = scmp.lt.u32.totalorder %s2271_s25, %s2791_s8 }
  0xe8   : > { %p2275_p6 = pneg %p2274_p0  ;;  %p2279_p4 = por %p2278_p2, %p2277_p8 }
  0xea   : > { %p2281_p7 = por %p2280_p10, %p2279_p4 }
  0xec   : > { %p2282_p12 = pnand %p2281_p7, %p2275_p6 }
  0xee   : > { %2285 = shalt.err (!%p2282_p12)
}
  0xef   : > { %s2286_s19 = scalar_lea.vmem %s2794_s21, 16  ;;  %s2427_s17 = smov [#allocation2]  }
  0xf0   : > { %p2287_p13 = scmp.ne.s32.totalorder %s2794_s21, %s2286_s19  ;;  %s2291_s12 = sshll.u32 %s2427_s17, 4  ;;  %s2292_s12 = int_to_ptr.vmem [resolvable:$false] %s2291_s12 }
  0xf1   : > { %s2293_s16 = scalar_lea.vmem %s2292_s12, 32  ;;  %p2294_p11 = scmp.lt.s32.totalorder %s2794_s21, %s2292_s12 }
  0xf2   : > { %p2289_p5 = pnand %p2287_p13, %p3144_p1  ;;  %p2295_p3 = scmp.lt.s32.totalorder %s2293_s16, %s2286_s19 }
  0xf4   : > { %p2290_p9 = pneg %p2289_p5  ;;  %p2296_p0 = por %p2295_p3, %p2294_p11 }
  0xf6   : > { %p2297_p8 = pnand %p2296_p0, %p2290_p9 }
  0xf8   : > { %2300 = shalt.err (!%p2297_p8)
}
  0xf9   : > { %p3145_p6 = scmp.ne.s32.totalorder %s3136_s30, 0  ;;  %s2301_s13 = scalar_lea.hbm %s2800_s9, 128 }
  0xfa   : > { %p2302_p2 = scmp.ne.s32.totalorder %s2800_s9, %s2301_s13  ;;  %s2306_s22 = scalar_lea.hbm %s3069_s2, 256 }
  0xfb   : > { %1982 = dma.hbm_to_vmem [thread:$0]  (!%p3145_p6), %s2791_s8, 16, %s2794_s21, %s454_s10  }
  0xfc   : > { %p2304_p4 = pnand %p2302_p2, %p3144_p1  ;;  %p2307_p7 = scmp.lt.u32.totalorder %s2800_s9, %s3069_s2 }
  0xfd   : > { %p2308_p12 = scmp.lt.u32.totalorder %s2306_s22, %s2301_s13  ;;  %p2310_p5 = scmp.lt.u32.totalorder %s2301_s13, %s2800_s9 }
  0xfe   : > { %p2305_p10 = pneg %p2304_p4 }
  0xff   : > { %p2309_p13 = por %p2308_p12, %p2307_p7 }
 0x101   : > { %p2311_p9 = por %p2310_p5, %p2309_p13 }
 0x103   : > { %p2312_p11 = pnand %p2311_p9, %p2305_p10 }
 0x105   : > { %2315 = shalt.err (!%p2312_p11)
}
 0x106   : > { %s2316_s8 = scalar_lea.vmem %s2718_s6, 128  ;;  %s2428_s21 = smov [#allocation7]  }
 0x107   : > { %p2317_p3 = scmp.ne.s32.totalorder %s2718_s6, %s2316_s8  ;;  %s2321_s10 = sshll.u32 %s2428_s21, 4  ;;  %s2322_s10 = int_to_ptr.vmem [resolvable:$false] %s2321_s10 }
 0x108   : > { %s2323_s3 = scalar_lea.vmem %s2322_s10, 256  ;;  %p2324_p2 = scmp.lt.s32.totalorder %s2718_s6, %s2322_s10 }
 0x109   : > { %p2319_p0 = pnand %p2317_p3, %p3144_p1  ;;  %p2325_p4 = scmp.lt.s32.totalorder %s2323_s3, %s2316_s8 }
 0x10b   : > { %p2320_p8 = pneg %p2319_p0  ;;  %p2326_p7 = por %p2325_p4, %p2324_p2 }
 0x10d   : > { %p2327_p12 = pnand %p2326_p7, %p2320_p8 }
 0x10f   : > { %2330 = shalt.err (!%p2327_p12)
}
 0x110   : > { %s3146_s1 = smov 1   ;;  %s3147_s23 = smov 16  }
 0x111   : > { %s3148_s29 = smov 32   ;;  %p3149_p1 = scmp.ne.s32.totalorder %s3123_s15, 0 }
 0x112   : > { %1988 = dma.hbm_to_vmem [thread:$0]  (!%p3145_p6), %s2800_s9, 128, %s2718_s6, %s2683_s5, %s3148_s29, %s3147_s23, %s3146_s1  }
 0x113   : > { %512 = sbr.rel (%p3149_p1) target bundleno = 1067 (0x42b), region = 72  ;;  %s2852_s24 = sand.u32 (!%p3149_p1), 1, %s2405_s26  }
 0x114   : > { %s515_s19 = scalar_lea.sflag (!%p3149_p1), [#allocation3], %s2852_s24  ;;  %s517_s17 = scalar_lea.vmem (!%p3149_p1), [#allocation2], %s2852_s24 }
 0x115   : > { %p3150_p10 = scmp.ne.s32.totalorder (!%p3149_p1), %s3131_s20, 0 }
 0x11a   : > { %2376 = dma.done.wait (%p3150_p10), %s515_s19, 16  }
 0x11b   : > { %2378 = vsyncadd (%p3150_p10), %s515_s19, 4294967280  ;;  %s522_s5 = sand.u32 1, %s2525_s14   ;;  %s1801_s30 = sshll.u32 %s2852_s24, 3 }
 0x11c   : > { %s523_s15 = scalar_lea.sflag [#allocation6], %s522_s5  ;;  %s2862_s6 = scalar_lea.vmem [#allocation5], %s1801_s30 }
 0x11d   : > { %2380 = dma.done.wait (%p3150_p10), %s523_s15, 256  }
 0x11e   : > { %2382 = vsyncadd (%p3150_p10), %s523_s15, 4294967040  ;;  %s2868_s9 = scalar_lea.vmem [#allocation7], %s1801_s30  ;;  %p3151_p6 = scmp.eq.s32.totalorder %s2525_s14, 0 }
 0x120   : > { %2384 = dma.done.wait (%p3151_p6), [#allocation9], 1024   ;;  %p3152_p13 = pmov %p3151_p6 }
 0x121   : > { %p3153_p5 = pmov %p3151_p6 }
 0x122   : > { %2386 = vsyncadd (%p3152_p13), [#allocation9], 4294966272 }
 0x123   : > { %2388 = dma.done.wait (%p3153_p5), [#allocation12], 640   ;;  %p3154_p9 = pmov %p3153_p5 }
 0x124   : > { %p3155_p11 = pmov %p3153_p5 }
 0x125   : > { %2390 = vsyncadd (%p3154_p9), [#allocation12], 4294966656 }
 0x126   : > { %2392 = dma.done.wait (%p3155_p11), [#allocation15], 640   ;;  %p3156_p3 = pmov %p3153_p5 }
 0x127   : > { %v2429_v0 = vmov 0.0|0.0   ;;  %v724_v1 = vlaneseq  ;;  %vm2430_vm0 = vmmov 0   ;;  %v2431_v2 = vmov 0.0   ;;  %v627_v7 = vld [vmem:[#allocation8] sm:$0xff]  ;;  %v628_v8 = vld [vmem:[#allocation8 + $0x8] sm:$0xff]  ;;  %v629_v12 = vld [vmem:[#allocation8 + $0x10] sm:$0xff] }
 0x128   : > { %2394 = vsyncadd (%p3156_p3), [#allocation15], 4294966656  ;;  %1898 = vmatprep.subr.bf16.mxu0 %v2429_v0  ;;  %1904 = vmatprep.subr.bf16.mxu1 %v2429_v0  ;;  %v2432_v3 = vmov 1966171168   ;;  %v705_v9 = vld [vmem:[#allocation10] sm:$0xff]  ;;  %v1899_v10 = vpack.c.bf16 %v628_v8, %v627_v7  ;;  %v706_v11 = vld [vmem:[#allocation10 + $0x8] sm:$0xff] }
 0x129   : > { %1851 = vmatprep.mubr.msk.f32.mxu0 %vm2430_vm0, %v2431_v2  ;;  %1862 = vmatprep.mubr.msk.f32.mxu1 %vm2430_vm0, %v2431_v2  ;;  %v722_v4 = vunpack.c.l.s4 %v2432_v3  ;;  %v725_v6 = vshrl.u32 %v724_v1, 7  ;;  %v630_v13 = vld [vmem:[#allocation8 + $0x18] sm:$0xff]  ;;  %v1905_v14 = vpack.c.bf16 %v706_v11, %v705_v9  ;;  %v707_v15 = vld [vmem:[#allocation10 + $0x10] sm:$0xff]  ;;  %v611_v19 = vld [vmem:[%s2862_s6] sm:$0x1]  ;;  %vm631_vm1 = vcmask 261120  }
 0x12a   : > { %v708_v16 = vld [vmem:[#allocation10 + $0x18] sm:$0xff]  ;;  %1900 = vmatpush3.bf16.msra.mxu0 %v1899_v10  ;;  %v1902_v18 = vpack.c.bf16 %v630_v13, %v629_v12  ;;  %v612_v20 = vld [vmem:[%s2862_s6 + $0x1] sm:$0x1]  ;;  %v613_v21 = vld [vmem:[%s2862_s6 + $0x2] sm:$0x1]  ;;  %s3157_s16 = sld [smem:[#allocation37_spill]] }
 0x12b   : > { %v723_v5 = vunpack.c.0.s8 %v722_v4  ;;  %1906 = vmatpush3.bf16.msra.mxu1 %v1905_v14  ;;  %1901 = vmatprep.subr.bf16.mxu0 %v2429_v0  ;;  %v1908_v22 = vpack.c.bf16 %v708_v16, %v707_v15  ;;  %v614_v23 = vld [vmem:[%s2862_s6 + $0x3] sm:$0x1]  ;;  %v615_v24 = vld [vmem:[%s2862_s6 + $0x4] sm:$0x1]  ;;  %v616_v25 = vld [vmem:[%s2862_s6 + $0x5] sm:$0x1]  ;;  %v717_v26 = vcombine.low %v611_v19, %v612_v20 }
 0x12c   : > { %1907 = vmatprep.subr.bf16.mxu1 %v2429_v0  ;;  %v617_v27 = vld [vmem:[%s2862_s6 + $0x6] sm:$0x1]  ;;  %v618_v28 = vld [vmem:[%s2862_s6 + $0x7] sm:$0x1]  ;;  %v718_v29 = vcombine.low %v613_v21, %v614_v23  ;;  %v719_v30 = vcombine.low %v615_v24, %v616_v25  ;;  %v610_v33 = vld [vmem:[%s517_s17] sm:$0x1] }
 0x12d   : > { %v2889_v17 = vsub.s32 %v723_v5, %v725_v6  ;;  %v720_v31 = vcombine.low %v617_v27, %v618_v28  ;;  %v838_v48 = vld [vmem:[#allocation11] sm:$0xff]  ;;  %v839_v49 = vld [vmem:[#allocation11 + $0x8] sm:$0xff]  ;;  %v840_v50 = vld [vmem:[#allocation11 + $0x10] sm:$0xff]  ;;  %s3158_s10 = sld [smem:[#allocation36_spill]]  ;;  %vm1384_vm2 = vcmp.lt.s32.totalorder %v724_v1, 32  ;;  %vm1425_vm3 = vcmask 253952  }
 0x12e   : > { %1903 = vmatpush3.bf16.msra.mxu0 %v1902_v18  ;;  %v1911_v51 = vpack.c.bf16 %v839_v49, %v838_v48  ;;  %v841_v52 = vld [vmem:[#allocation11 + $0x18] sm:$0xff]  ;;  %v1040_v14 = vld [vmem:[#allocation13] sm:$0xff]  ;;  %s3159_s23 = sld [smem:[#allocation34_spill]]  ;;  %s3160_s29 = sld [smem:[#allocation29_spill]] }
 0x12f   : > { %v727_v32 = vrot.slane %v717_v26, %v2889_v17  ;;  %v734_v34 = vrot.slane %v718_v29, %v2889_v17  ;;  %v741_v35 = vrot.slane %v719_v30, %v2889_v17  ;;  %1909 = vmatpush3.bf16.msra.mxu1 %v1908_v22  ;;  %v748_v36 = vrot.slane %v720_v31, %v2889_v17  ;;  %v619_v53 = vld [vmem:[%s2868_s9] sm:$0x1]  ;;  %v620_v54 = vld [vmem:[%s2868_s9 + $0x1] sm:$0x1]  ;;  %v621_v55 = vld [vmem:[%s2868_s9 + $0x2] sm:$0x1] }
 0x130   : > { %1910 = vmatprep.subr.bf16.mxu0 %v2429_v0  ;;  %1916 = vmatprep.subr.bf16.mxu1 %v2429_v0  ;;  %v1123_v42 = vld [vmem:[%s3157_s16] sm:$0xff]  ;;  %v1124_v43 = vld [vmem:[%s3157_s16 + $0x8] sm:$0xff]  ;;  %v1125_v45 = vld [vmem:[%s3157_s16 + $0x10] sm:$0xff]  ;;  %v857_v58 = vcombine.low %v619_v53, %v620_v54  ;;  %v1914_v59 = vpack.c.bf16 %v841_v52, %v840_v50  ;;  %v1050_v15 = vcombine.high %v1040_v14, %v1040_v14  ;;  %s3161_s5 = sld [smem:[#allocation38_spill]]  ;;  %s1815_s30 = sshll.u32 %s2525_s14, 4 }
 0x131   : > { %v749_v37 = vcombine.low %v727_v32, %v734_v34  ;;  %1852 = vmatmul.mubr.msk.f32.vlgmr.msra.gmra.mrb[0].mxu0 %vm631_vm1, %v610_v33  ;;  %v750_v38 = vcombine.low %v741_v35, %v748_v36  ;;  %v1917_v44 = vpack.c.bf16 %v1124_v43, %v1123_v42  ;;  %v1126_v46 = vld [vmem:[%s3157_s16 + $0x18] sm:$0xff]  ;;  %v1057_v16 = vrot.slane %v1040_v14, %v2889_v17  ;;  %s609_s15 = scalar_lea.vmem [#allocation17], %s2852_s24  ;;  %s3162_s12 = sld [smem:[#allocation39_spill]] }
 0x132   : > { %1873 = vmatprep.mubr.msk.f32.mxu0 %vm2430_vm0, %v2431_v2  ;;  %v1920_v47 = vpack.c.bf16 %v1126_v46, %v1125_v45  ;;  %v622_v56 = vld [vmem:[%s2868_s9 + $0x3] sm:$0x1]  ;;  %v623_v57 = vld [vmem:[%s2868_s9 + $0x4] sm:$0x1]  ;;  %1912 = vmatpush3.bf16.msra.mxu0 %v1911_v51  ;;  %v624_v60 = vld [vmem:[%s2868_s9 + $0x5] sm:$0x1]  ;;  %v867_v5 = vrot.slane %v857_v58, %v2889_v17  ;;  %v1064_v18 = vrot.slane %v1050_v15, %v2889_v17 }
 0x133   : > { %v757_v39 = vrot.slane %v749_v37, %v2889_v17  ;;  %v764_v40 = vrot.slane %v750_v38, %v2889_v17  ;;  %v625_v61 = vld [vmem:[%s2868_s9 + $0x6] sm:$0x1]  ;;  %v626_v62 = vld [vmem:[%s2868_s9 + $0x7] sm:$0x1]  ;;  %v858_v63 = vcombine.low %v621_v55, %v622_v56  ;;  %1913 = vmatprep.subr.bf16.mxu0 %v2429_v0  ;;  %v859_v3 = vcombine.low %v623_v57, %v624_v60  ;;  %s1623_s6 = sshll.u32 %s609_s15, 4  ;;  %s1611_s18 = scalar_lea.sflag [#allocation4], %s2852_s24  ;;  %s3024_s6 = int_to_ptr.vmem [resolvable:$true] %s1623_s6 }
 0x134   : > { %v860_v4 = vcombine.low %v625_v61, %v626_v62  ;;  %v1065_v19 = vcombine.high %v1057_v16, %v1057_v16  ;;  %v978_v21 = vld [vmem:[%s3158_s10] sm:$0x1]  ;;  %v1066_v22 = vcombine.high %v1064_v18, %v1064_v18  ;;  %v1073_v24 = vrot.slane %v1057_v16, %v2889_v17  ;;  %s2331_s27 = scalar_lea.vmem %s3024_s6, 16  ;;  %p3163_p8 = scmp.ne.s32.totalorder %s3160_s29, 0 }
 0x135   : > { %v765_v41 = vcombine.low %v757_v39, %v764_v40  ;;  %v874_v6 = vrot.slane %v858_v63, %v2889_v17  ;;  %v881_v7 = vrot.slane %v859_v3, %v2889_v17  ;;  %p2332_p0 = scmp.ne.s32.totalorder %s3024_s6, %s2331_s27  ;;  %s2433_s14 = smov [#allocation17]  }
 0x136   : > { %v888_v8 = vrot.slane %v860_v4, %v2889_v17  ;;  %1915 = vmatpush3.bf16.msra.mxu0 %v1914_v59  ;;  %v1087_v25 = vrot.slane %v1065_v19, %v2889_v17  ;;  %v1094_v27 = vrot.slane %v1066_v22, %v2889_v17  ;;  %v1095_v30 = vcombine.high %v1073_v24, %v1073_v24  ;;  %s2335_s22 = sshll.u32 %s2433_s14, 4  ;;  %s2336_s22 = int_to_ptr.vmem [resolvable:$false] %s2335_s22 }
 0x137   : > { %1863 = vmatmul.mubr.msk.f32.vlgmr.msra.gmra.mrb[0].mxu1 %vm631_vm1, %v765_v41  ;;  %v889_v9 = vcombine.low %v867_v5, %v874_v6  ;;  %1922 = vmatprep.subr.bf16.mxu0 %v2429_v0  ;;  %s3022_s13 = scalar_lea.hbm %s3162_s12, %s1815_s30  ;;  %p2333_p2 = pnand %p2332_p0, %p3163_p8 }
 0x138   : > { %1884 = vmatprep.mubr.msk.f32.mxu1 %vm2430_vm0, %v2431_v2  ;;  %1918 = vmatpush3.bf16.msra.mxu1 %v1917_v44  ;;  %v890_v10 = vcombine.low %v881_v7, %v888_v8  ;;  %v1097_v31 = vcombine.high %v1087_v25, %v1087_v25  ;;  %v1098_v40 = vcombine.high %v1094_v27, %v1094_v27  ;;  %s2337_s25 = scalar_lea.vmem %s2336_s22, 32  ;;  %p2338_p7 = scmp.lt.s32.totalorder %s3024_s6, %s2336_s22 }
 0x139   : > { %1919 = vmatprep.subr.bf16.mxu1 %v2429_v0  ;;  %v897_v11 = vrot.slane %v889_v9, %v2889_v17  ;;  %p2334_p4 = pneg %p2333_p2  ;;  %p2339_p12 = scmp.lt.s32.totalorder %s2337_s25, %s2331_s27 }
 0x13a   : > { %v904_v12 = vrot.slane %v890_v10, %v2889_v17 }
 0x13b   : > { %p2340_p1 = por %p2339_p12, %p2338_p7 }
 0x13c   : > { %1921 = vmatpush3.bf16.msra.mxu1 %v1920_v47  ;;  %v905_v13 = vcombine.low %v897_v11, %v904_v12 }
 0x13d   : > { %p2341_p10 = pnand %p2340_p1, %p2334_p4 }
 0x13e   : > { %1874 = vmatmul.mubr.msk.f32.vlgmr.msra.gmra.mrb[2].mxu0 %vm631_vm1, %v905_v13 }
 0x13f   : > { %1895 = vmatprep.mubr.msk.f32.mxu0 %vm2430_vm0, %v2431_v2  ;;  %v1080_v2 = vrot.slane %v1064_v18, %v2889_v17 }
 0x141   : > { %v1096_v36 = vcombine.high %v1080_v2, %v1080_v2 }
 0x204   : > { %v701_v20 = vpop.f32.mrb[0].mxu0 }
 0x205   : > { %v1853_v23 = vpop.f32.mrb[1].mxu0  ;;  %v979_v26 = vadd.f32 %v978_v21, %v701_v20  ;;  %v981_v28 = vmul.f32 0.35355338, %v701_v20 }
 0x207   : > { %v980_v35 = vmul.f32 0.35355338, %v979_v26  ;;  %v1107_v41 = vmul.f32 %v1073_v24, %v981_v28  ;;  %v1108_v42 = vmul.f32 %v1087_v25, %v981_v28  ;;  %v1109_v43 = vmul.f32 %v1095_v30, %v981_v28 }
 0x208   : > { %v1110_v44 = vmul.f32 %v1097_v31, %v981_v28  ;;  %v1111_v50 = vmul.f32 %v1080_v2, %v981_v28  ;;  %v1112_v51 = vmul.f32 %v1094_v27, %v981_v28  ;;  %v1113_v52 = vmul.f32 %v1096_v36, %v981_v28  ;;  %v1531_v27 = vld [vmem:[#allocation16] sm:$0xff]  ;;  %v1534_v31 = vld [vmem:[#allocation16 + $0x18] sm:$0xff] }
 0x209   : > { %v1114_v3 = vmul.f32 %v1098_v40, %v981_v28  ;;  %v1532_v28 = vld [vmem:[#allocation16 + $0x8] sm:$0xff] }
 0x20a   : > { %v834_v29 = vpop.f32.mrb[0].mxu1  ;;  %v1923_v30 = vpack.c.bf16 %v1532_v28, %v1531_v27 }
 0x20b   : > { %v983_v32 = vcombine.high %v834_v29, %v834_v29  ;;  %v990_v33 = vrot.slane %v834_v29, %v2889_v17  ;;  %v1864_v34 = vpop.f32.mrb[1].mxu1  ;;  %v1533_v29 = vld [vmem:[#allocation16 + $0x10] sm:$0xff] }
 0x20c   : > { %1924 = vmatpush3.bf16.msra.mxu0 %v1923_v30 }
 0x20d   : > { %v997_v37 = vrot.slane %v983_v32, %v2889_v17  ;;  %v998_v38 = vcombine.high %v990_v33, %v990_v33  ;;  %v1006_v39 = vrot.slane %v990_v33, %v2889_v17  ;;  %v1926_v32 = vpack.c.bf16 %v1534_v31, %v1533_v29  ;;  %1925 = vmatprep.subr.bf16.mxu0 %v2429_v0  ;;  %v1314_v33 = vld [vmem:[#allocation14] sm:$0xff] }
 0x20e   : > { %v1315_v34 = vmul.f32 0.35355338, %v1314_v33 }
 0x20f   : > { %v999_v45 = vcombine.high %v997_v37, %v997_v37  ;;  %v1013_v46 = vrot.slane %v997_v37, %v2889_v17  ;;  %v1020_v47 = vrot.slane %v998_v38, %v2889_v17  ;;  %v1028_v48 = vcombine.high %v1006_v39, %v1006_v39 }
 0x210   : > { %v1041_v49 = vmul.f32 %v1006_v39, %v980_v35  ;;  %1927 = vmatpush3.bf16.msra.mxu0 %v1926_v32  ;;  %v1324_v36 = vrot.slane %v1315_v34, %v2889_v17 }
 0x211   : > { %v1027_v53 = vrot.slane %v999_v45, %v2889_v17  ;;  %v1029_v54 = vcombine.high %v1013_v46, %v1013_v46  ;;  %v1030_v55 = vcombine.high %v1020_v47, %v1020_v47  ;;  %v1042_v56 = vmul.f32 %v1020_v47, %v980_v35  ;;  %v2971_v26 = vpop.f32.mrb[2].mxu0 }
 0x212   : > { %v1043_v57 = vmul.f32 %v1028_v48, %v980_v35  ;;  %v1045_v58 = vmul.f32 %v1013_v46, %v980_v35  ;;  %v1115_v59 = vadd.f32 %v1107_v41, %v1041_v49  ;;  %v1875_v2 = vpop.f32.mrb[3].mxu0  ;;  %v1332_v38 = vcombine.high %v1324_v36, %v1324_v36 }
 0x213   : > { %v1031_v60 = vcombine.high %v1027_v53, %v1027_v53  ;;  %v1044_v61 = vmul.f32 %v1030_v55, %v980_v35  ;;  %v1046_v62 = vmul.f32 %v1027_v53, %v980_v35  ;;  %v1047_v63 = vmul.f32 %v1029_v54, %v980_v35 }
 0x214   : > { %v1116_v4 = vadd.f32 %v1108_v42, %v1042_v56  ;;  %v1117_v5 = vadd.f32 %v1109_v43, %v1043_v57  ;;  %v1119_v6 = vadd.f32 %v1111_v50, %v1045_v58  ;;  %v1340_v41 = vrot.slane %v1324_v36, %v2889_v17 }
 0x215   : > { %v1048_v7 = vmul.f32 %v1031_v60, %v980_v35  ;;  %v1118_v8 = vadd.f32 %v1110_v44, %v1044_v61  ;;  %v1120_v9 = vadd.f32 %v1112_v51, %v1046_v62  ;;  %v1121_v10 = vadd.f32 %v1113_v52, %v1047_v63 }
 0x216   : > { %v1135_v11 = vcombine.low %v1115_v59, %v1116_v4  ;;  %v1317_v35 = vcombine.high %v1315_v34, %v1315_v34  ;;  %v1354_v43 = vrot.slane %v1332_v38, %v2889_v17  ;;  %v1362_v50 = vcombine.high %v1340_v41, %v1340_v41 }
 0x217   : > { %v1122_v12 = vadd.f32 %v1114_v3, %v1048_v7  ;;  %v1136_v13 = vcombine.low %v1117_v5, %v1118_v8  ;;  %v1137_v14 = vcombine.low %v1119_v6, %v1120_v9 }
 0x218   : > { %v1145_v16 = vrot.slane %v1135_v11, %v2889_v17  ;;  %v1331_v37 = vrot.slane %v1317_v35, %v2889_v17  ;;  %v1364_v52 = vcombine.high %v1354_v43, %v1354_v43 }
 0x219   : > { %v1138_v15 = vcombine.low %v1121_v10, %v1122_v12  ;;  %v1152_v18 = vrot.slane %v1136_v13, %v2889_v17  ;;  %v1159_v19 = vrot.slane %v1137_v14, %v2889_v17 }
 0x21a   : > { %v1333_v39 = vcombine.high %v1331_v37, %v1331_v37  ;;  %v1347_v42 = vrot.slane %v1331_v37, %v2889_v17 }
 0x21b   : > { %v1166_v20 = vrot.slane %v1138_v15, %v2889_v17  ;;  %v1167_v21 = vcombine.low %v1145_v16, %v1152_v18 }
 0x21c   : > { %v1361_v46 = vrot.slane %v1333_v39, %v2889_v17  ;;  %v1363_v51 = vcombine.high %v1347_v42, %v1347_v42 }
 0x21d   : > { %v1168_v22 = vcombine.low %v1159_v19, %v1166_v20  ;;  %v1175_v23 = vrot.slane %v1167_v21, %v2889_v17 }
 0x21e   : > { %v1365_v57 = vcombine.high %v1361_v46, %v1361_v46 }
 0x21f   : > { %v1182_v24 = vrot.slane %v1168_v22, %v2889_v17 }
 0x221   : > { %v1183_v25 = vcombine.low %v1175_v23, %v1182_v24 }
 0x223   : > { %1885 = vmatmul.mubr.msk.f32.vlgmr.msra.gmra.mrb[2].mxu1 %vm631_vm1, %v1183_v25 }
 0x2f6   : > { %v1252_v40 = vpop.f32.mrb[2].mxu1 }
 0x2f7   : > { %v1257_v44 = vcombine.high %v1252_v40, %v1252_v40  ;;  %v1264_v0 = vrot.slane %v1252_v40, %v2889_v17  ;;  %v1886_v45 = vpop.f32.mrb[3].mxu1 }
 0x2f9   : > { %v1271_v47 = vrot.slane %v1257_v44, %v2889_v17  ;;  %v1272_v48 = vcombine.high %v1264_v0, %v1264_v0  ;;  %v1280_v49 = vrot.slane %v1264_v0, %v2889_v17 }
 0x2fb   : > { %v1273_v53 = vcombine.high %v1271_v47, %v1271_v47  ;;  %v1287_v54 = vrot.slane %v1271_v47, %v2889_v17  ;;  %v1294_v55 = vrot.slane %v1272_v48, %v2889_v17  ;;  %v1302_v56 = vcombine.high %v1280_v49, %v1280_v49  ;;  %v1811_v47 = vld [vmem:[%s3159_s23] ss:$0 sm:$0xff] }
 0x2fc   : > { %v1374_v62 = vadd.f32 %v1340_v41, %v1280_v49 }
 0x2fd   : > { %v1301_v58 = vrot.slane %v1273_v53, %v2889_v17  ;;  %v1303_v59 = vcombine.high %v1287_v54, %v1287_v54  ;;  %v1304_v60 = vcombine.high %v1294_v55, %v1294_v55  ;;  %v1375_v61 = vadd.f32 %v1354_v43, %v1294_v55 }
 0x2fe   : > { %v1376_v63 = vadd.f32 %v1362_v50, %v1302_v56  ;;  %v1378_v3 = vadd.f32 %v1347_v42, %v1287_v54  ;;  %v1386_v14 = vsel %vm1384_vm2, %v1374_v62, -inf  ;;  %v975_v53 = vadd.f32 %v1811_v47, %v2971_v26 }
 0x2ff   : > { %v1305_v4 = vcombine.high %v1301_v58, %v1301_v58  ;;  %v1377_v5 = vadd.f32 %v1364_v52, %v1304_v60  ;;  %v1379_v6 = vadd.f32 %v1361_v46, %v1301_v58  ;;  %v1380_v7 = vadd.f32 %v1363_v51, %v1303_v59 }
 0x300   : > { %v1387_v9 = vsel %vm1384_vm2, %v1375_v61, -inf  ;;  %v1390_v10 = vsel %vm1384_vm2, %v1378_v3, -inf  ;;  %v1388_v15 = vsel %vm1384_vm2, %v1376_v63, -inf  ;;  %v1451_v60 = vcombine.high %v975_v53, %v975_v53 }
 0x301   : > { %v1381_v8 = vadd.f32 %v1365_v57, %v1305_v4  ;;  %v1392_v11 = vsel %vm1384_vm2, %v1379_v6, -inf  ;;  %v1394_v13 = vsel %vm1384_vm2, %v1380_v7, -inf  ;;  %v1389_v16 = vsel %vm1384_vm2, %v1377_v5, -inf }
 0x302   : > { %v1393_v12 = vmax.f32 %v1387_v9, %v1392_v11  ;;  %v1391_v19 = vmax.f32 %v1386_v14, %v1390_v10  ;;  %v1395_v20 = vmax.f32 %v1388_v15, %v1394_v13 }
 0x303   : > { %v1396_v18 = vsel %vm1384_vm2, %v1381_v8, -inf }
 0x304   : > { %v1397_v21 = vmax.f32 %v1389_v16, %v1396_v18  ;;  %v1398_v22 = vmax.f32 %v1391_v19, %v1393_v12 }
 0x306   : > { %v1399_v23 = vmax.f32 %v1395_v20, %v1397_v21 }
 0x308   : > { %v1400_v24 = vmax.f32 %v1398_v22, %v1399_v23 }
 0x30a   : > { %v1401_v25 = vsub.f32 %v1374_v62, %v1400_v24  ;;  %v1402_v2 = vsub.f32 %v1375_v61, %v1400_v24  ;;  %v1403_v27 = vsub.f32 %v1376_v63, %v1400_v24  ;;  %v1404_v1 = vsub.f32 %v1377_v5, %v1400_v24 }
 0x30b   : > { %v1405_v28 = vsub.f32 %v1378_v3, %v1400_v24  ;;  %v1406_v32 = vsub.f32 %v1379_v6, %v1400_v24  ;;  %v1407_v34 = vsub.f32 %v1380_v7, %v1400_v24  ;;  %v1408_v36 = vsub.f32 %v1381_v8, %v1400_v24 }
 0x30c   : > { %v1409_v29 = vmul.f32 1.442695, %v1401_v25  ;;  %v1411_v30 = vmul.f32 1.442695, %v1402_v2  ;;  %v1413_v31 = vmul.f32 1.442695, %v1403_v27  ;;  %v1458_v3 = vrot.slane %v975_v53, %v2889_v17 }
 0x30d   : > { %v1415_v33 = vmul.f32 1.442695, %v1404_v1  ;;  %v1417_v35 = vmul.f32 1.442695, %v1405_v28  ;;  %v1419_v37 = vmul.f32 1.442695, %v1406_v32  ;;  %v1465_v5 = vrot.slane %v1451_v60, %v2889_v17 }
 0x30e   : > { %2055 = vpow2.f32 %v1409_v29  ;;  %v1421_v38 = vmul.f32 1.442695, %v1407_v34  ;;  %v1423_v39 = vmul.f32 1.442695, %v1408_v36  ;;  %v1466_v26 = vcombine.high %v1458_v3, %v1458_v3 }
 0x30f   : > { %2057 = vpow2.f32 %v1411_v30  ;;  %v1467_v6 = vcombine.high %v1465_v5, %v1465_v5  ;;  %v1474_v7 = vrot.slane %v1458_v3, %v2889_v17  ;;  %v1481_v9 = vrot.slane %v1465_v5, %v2889_v17 }
 0x310   : > { %2059 = vpow2.f32 %v1413_v31  ;;  %v1488_v8 = vrot.slane %v1466_v26, %v2889_v17 }
 0x311   : > { %2061 = vpow2.f32 %v1415_v33  ;;  %v1495_v10 = vrot.slane %v1467_v6, %v2889_v17  ;;  %v1496_v11 = vcombine.high %v1474_v7, %v1474_v7  ;;  %v1497_v14 = vcombine.high %v1481_v9, %v1481_v9 }
 0x312   : > { %2063 = vpow2.f32 %v1417_v35  ;;  %v1498_v12 = vcombine.high %v1488_v8, %v1488_v8 }
 0x313   : > { %2065 = vpow2.f32 %v1419_v37  ;;  %v1499_v15 = vcombine.high %v1495_v10, %v1495_v10 }
 0x314   : > { %2067 = vpow2.f32 %v1421_v38 }
 0x315   : > { %2069 = vpow2.f32 %v1423_v39 }
 0x318   : > { %v2056_v40 = vpop.eup %2055 }
 0x319   : > { %v2058_v41 = vpop.eup %2057  ;;  %v1426_v42 = vsel %vm1425_vm3, %v2056_v40, 0.0 }
 0x31a   : > { %v2060_v43 = vpop.eup %2059  ;;  %v1427_v44 = vsel %vm1425_vm3, %v2058_v41, 0.0 }
 0x31b   : > { %v2062_v0 = vpop.eup %2061  ;;  %v1428_v45 = vadd.f32 %v1427_v44, %v1426_v42  ;;  %v1429_v46 = vsel %vm1425_vm3, %v2060_v43, 0.0 }
 0x31c   : > { %v2064_v48 = vpop.eup %2063  ;;  %v1431_v50 = vsel %vm1425_vm3, %v2062_v0, 0.0 }
 0x31d   : > { %v1430_v49 = vadd.f32 %v1429_v46, %v1428_v45  ;;  %v2066_v51 = vpop.eup %2065  ;;  %v1433_v54 = vsel %vm1425_vm3, %v2064_v48, 0.0  ;;  %v1535_v45 = vld [vmem:[%s3161_s5] sm:$0x1] }
 0x31e   : > { %v2068_v55 = vpop.eup %2067  ;;  %v1435_v57 = vsel %vm1425_vm3, %v2066_v51, 0.0 }
 0x31f   : > { %v1432_v52 = vadd.f32 %v1431_v50, %v1430_v49  ;;  %v2070_v58 = vpop.eup %2069  ;;  %v1437_v61 = vsel %vm1425_vm3, %v2068_v55, 0.0 }
 0x320   : > { %v1439_v63 = vsel %vm1425_vm3, %v2070_v58, 0.0 }
 0x321   : > { %v1434_v56 = vadd.f32 %v1433_v54, %v1432_v52 }
 0x323   : > { %v1436_v59 = vadd.f32 %v1435_v57, %v1434_v56 }
 0x325   : > { %v1438_v62 = vadd.f32 %v1437_v61, %v1436_v59 }
 0x327   : > { %v1440_v4 = vadd.f32 %v1439_v63, %v1438_v62 }
 0x329   : > { %2071 = vrcp.f32 %v1440_v4 }
 0x333   : > { %v2072_v13 = vpop.eup %2071 }
 0x334   : > { %v1442_v16 = vmul.f32 %v2072_v13, %v2056_v40  ;;  %v1443_v18 = vmul.f32 %v2072_v13, %v2058_v41  ;;  %v1444_v19 = vmul.f32 %v2072_v13, %v2060_v43  ;;  %v1445_v20 = vmul.f32 %v2072_v13, %v2062_v0 }
 0x335   : > { %v1446_v21 = vmul.f32 %v2072_v13, %v2064_v48  ;;  %v1447_v22 = vmul.f32 %v2072_v13, %v2066_v51  ;;  %v1448_v23 = vmul.f32 %v2072_v13, %v2068_v55  ;;  %v1449_v24 = vmul.f32 %v2072_v13, %v2070_v58 }
 0x336   : > { %v1508_v25 = vmul.f32 %v1474_v7, %v1442_v16  ;;  %v1509_v2 = vmul.f32 %v1488_v8, %v1443_v18  ;;  %v1510_v27 = vmul.f32 %v1496_v11, %v1444_v19  ;;  %v1511_v1 = vmul.f32 %v1498_v12, %v1445_v20 }
 0x337   : > { %v1512_v28 = vmul.f32 %v1481_v9, %v1446_v21  ;;  %v1513_v29 = vmul.f32 %v1495_v10, %v1447_v22  ;;  %v1514_v17 = vmul.f32 %v1497_v14, %v1448_v23  ;;  %v1515_v30 = vmul.f32 %v1499_v15, %v1449_v24 }
 0x338   : > { %v1516_v31 = vsel %vm1425_vm3, %v1508_v25, 0.0  ;;  %v1517_v32 = vsel %vm1425_vm3, %v1509_v2, 0.0  ;;  %v1519_v34 = vsel %vm1425_vm3, %v1510_v27, 0.0  ;;  %v1521_v36 = vsel %vm1425_vm3, %v1511_v1, 0.0 }
 0x339   : > { %v1518_v33 = vadd.f32 %v1517_v32, %v1516_v31  ;;  %v1523_v38 = vsel %vm1425_vm3, %v1512_v28, 0.0  ;;  %v1525_v40 = vsel %vm1425_vm3, %v1513_v29, 0.0  ;;  %v1527_v42 = vsel %vm1425_vm3, %v1514_v17, 0.0 }
 0x33a   : > { %v1529_v44 = vsel %vm1425_vm3, %v1515_v30, 0.0 }
 0x33b   : > { %v1520_v35 = vadd.f32 %v1519_v34, %v1518_v33 }
 0x33d   : > { %v1522_v37 = vadd.f32 %v1521_v36, %v1520_v35 }
 0x33f   : > { %v1524_v39 = vadd.f32 %v1523_v38, %v1522_v37 }
 0x341   : > { %v1526_v41 = vadd.f32 %v1525_v40, %v1524_v39 }
 0x343   : > { %v1528_v43 = vadd.f32 %v1527_v42, %v1526_v41 }
 0x345   : > { %v1530_v0 = vadd.f32 %v1529_v44, %v1528_v43 }
 0x347   : > { %1896 = vmatmul.mubr.msk.f32.vlgmr.msra.gmra.mrb[4].mxu0 %vm631_vm1, %v1530_v0 }
 0x41a   : > { %v1605_v46 = vpop.f32.mrb[4].mxu0 }
 0x41b   : > { %v1606_v47 = vadd.f32 %v1605_v46, %v1535_v45  ;;  %v1897_v48 = vpop.f32.mrb[5].mxu0 }
 0x41d   : > { %1609 = vst.msk [vmem:[%s609_s15] sm:$0x1] %vm1425_vm3, %v1606_v47 }
 0x41e   : > { %2344 = shalt.err (!%p2341_p10)
}
 0x41f   : > { %s2345_s24 = scalar_lea.hbm %s3022_s13, 16  ;;  %s2349_s21 = scalar_lea.hbm %s3162_s12, 32 }
 0x420   : > { %p2346_p6 = scmp.ne.s32.totalorder %s3022_s13, %s2345_s24  ;;  %p2350_p9 = scmp.lt.u32.totalorder %s3022_s13, %s3162_s12 }
 0x421   : > { %p2351_p11 = scmp.lt.u32.totalorder %s2349_s21, %s2345_s24  ;;  %p2353_p0 = scmp.lt.u32.totalorder %s2345_s24, %s3022_s13 }
 0x422   : > { %p2347_p13 = pnand %p2346_p6, %p3163_p8 }
 0x423   : > { %p2352_p3 = por %p2351_p11, %p2350_p9 }
 0x424   : > { %p2348_p5 = pneg %p2347_p13 }
 0x425   : > { %p2354_p2 = por %p2353_p0, %p2352_p3 }
 0x427   : > { %p2355_p4 = pnand %p2354_p2, %p2348_p5 }
 0x429   : > { %2358 = shalt.err (!%p2355_p4)
}
 0x42a   : > { %1958 = dma.vmem_to_hbm [thread:$0]  (%p3163_p8), %s3024_s6, 16, %s3022_s13, %s1611_s18  }
 0x42b PF: > { %s3164_s1 = sld [smem:[#allocation24_spill]]  ;;  %s3165_s23 = sld [smem:[#allocation30_spill]] }
 0x42c   : > { %s3166_s19 = sld [smem:[#allocation26_spill]] }
 0x431   : > { %s1635_s17 = sand.u32 1, %s3164_s1   ;;  %p3167_p7 = scmp.ne.s32.totalorder %s3165_s23, 0 }
 0x432   : > { %p3168_p12 = scmp.ge.s32.totalorder %s3166_s19, 2  ;;  %s1636_s5 = scalar_lea.sflag [#allocation4], %s1635_s17 }
 0x434   : > { %p1990_p1 = pnand %p3168_p12, %p3167_p7 }
 0x436   : > { %2396 = dma.done.wait (!%p1990_p1), %s1636_s5, 16  }
 0x437   : > { %2398 = vsyncadd (!%p1990_p1), %s1636_s5, 4294967280  ;;  %s3169_s28 = sld [smem:[#allocation27_spill]]  ;;  %s3170_s30 = sld [smem:[#allocation25_spill]] }
 0x438   : > { %s3171_s27 = sld [smem:[#allocation28_spill]]  ;;  %s3172_s25 = smov %s2405_s26 }
 0x43d   : > { %p32_p10 = scmp.ge.s32.totalorder %s3169_s28, 4   ;;  %s3173_s26 = smov %s3170_s30 }
 0x43f   :  { %34 = sbr.rel (!%p32_p10) target bundleno = 20 (0x14), region = 165 }
 0x446   :  { %1640 = vsyncpa [#allocation3], 1 }
 0x447   :  { %1642 = vsyncpa [#allocation3 + $0x1], 1 }
 0x448   :  { %1643 = vsyncpa [#allocation6], 1 }
 0x449   :  { %1645 = vsyncpa [#allocation6 + $0x1], 1 }
 0x44a   :  { %1646 = vsyncpa [#allocation9], 1 }
 0x44b   :  { %1647 = vsyncpa [#allocation12], 1 }
 0x44c   :  { %1648 = vsyncpa [#allocation15], 1 }
 0x44d   :  { %1649 = vsyncpa [#allocation4], 1 }
 0x44e   :  { %1651 = vsyncpa [#allocation4 + $0x1], 1 }

// kernel: tpu_custom_call.1
= control target key start
LH: loop header
LB: loop body
LE: loop exit
PB: predicated region body
PF: predicated region fallthrough
CT: control target
= control target key end

     0   :  { %s3067_s0 = inlined_call_operand.hbm [shape: f32[2,1,32], index: 0, kind: input, shape index: {}]   ;;  %s3068_s1 = inlined_call_operand.hbm [shape: f32[8,2,1,32], index: 1, kind: input, shape index: {}]   ;;  %s3069_s2 = inlined_call_operand.hbm [shape: f32[8,2,1,32], index: 2, kind: input, shape index: {}]   ;;  %s3070_s3 = inlined_call_operand.hbm [shape: f32[32,32], index: 3, kind: input, shape index: {}]   ;;  %s3071_s4 = inlined_call_operand.hbm [shape: f32[32,32], index: 4, kind: input, shape index: {}]   ;;  %s3072_s5 = inlined_call_operand.hbm [shape: f32[32,32], index: 5, kind: input, shape index: {}]   ;;  %s3073_s6 = inlined_call_operand.vmem [shape: f32[1,32], index: 6, kind: input, shape index: {}]   ;;  %s3074_s7 = inlined_call_operand.hbm [shape: f32[8,32], index: 7, kind: input, shape index: {}]   ;;  %s3075_s8 = inlined_call_operand.hbm [shape: f32[8,32], index: 8, kind: input, shape index: {}]   ;;  %s3076_s9 = inlined_call_operand.vmem [shape: f32[1,32], index: 9, kind: input, shape index: {}]   ;;  %s3077_s10 = inlined_call_operand.vmem [shape: f32[32,32], index: 10, kind: input, shape index: {}]   ;;  %s3078_s11 = inlined_call_operand.hbm [shape: f32[32,32], index: 11, kind: input, shape index: {}]   ;;  %s3079_s12 = inlined_call_operand.vmem [shape: f32[1,32], index: 12, kind: input, shape index: {}]   ;;  %s3080_s13 = inlined_call_operand.hbm [shape: f32[2,1,32], index: 13, kind: output, shape index: {}]  }
   0x1   :  { %3111 = sst [smem:[#allocation31_spill]] %s3068_s1 }
   0x2   :  { %3112 = sst [smem:[#allocation32_spill]] %s3070_s3 }
   0x3   :  { %3113 = sst [smem:[#allocation33_spill]] %s3072_s5 }
   0x4   :  { %3114 = sst [smem:[#allocation34_spill]] %s3073_s6 }
   0x5   :  { %3115 = sst [smem:[#allocation35_spill]] %s3075_s8 }
   0x6   :  { %3116 = sst [smem:[#allocation36_spill]] %s3076_s9 }
   0x7   :  { %3117 = sst [smem:[#allocation37_spill]] %s3077_s10 }
   0x8   :  { %3118 = sst [smem:[#allocation38_spill]] %s3079_s12 }
   0x9   :  { %3119 = sst [smem:[#allocation39_spill]] %s3080_s13 }
   0xa   :  { %18 = vsyncpa [#allocation3], 0 }
   0xb   :  { %20 = vsyncpa [#allocation3 + $0x1], 0 }
   0xc   :  { %21 = vsyncpa [#allocation6], 0 }
   0xd   :  { %23 = vsyncpa [#allocation6 + $0x1], 0 }
   0xe   :  { %24 = vsyncpa [#allocation9], 0 }
   0xf   :  { %25 = vsyncpa [#allocation12], 0 }
  0x10   :  { %26 = vsyncpa [#allocation15], 0 }
  0x11   :  { %27 = vsyncpa [#allocation4], 0 }
  0x12   :  { %29 = vsyncpa [#allocation4 + $0x1], 0  ;;  %s2504_s25 = smov 0   ;;  %s2506_s26 = smov 0  }
  0x13   :  { %s2508_s27 = smov 0   ;;  %s2510_s28 = smov 0  }
  0x14 LB: > { %3120 = sst [smem:[#allocation24_spill]] %s2401_s25  ;;  %s2415_s29 = smov [#allocation8]   ;;  %s2413_s28 = sphi %s2510_s28, %s3169_s28   ;;  %s2409_s27 = sphi %s2508_s27, %s3171_s27   ;;  %s2405_s26 = sphi %s2506_s26, %s3173_s26   ;;  %s2401_s25 = sphi %s2504_s25, %s3172_s25  }
  0x15   : > { %3121 = sst [smem:[#allocation25_spill]] %s2409_s27  ;;  %s366_s30 = sshll.u32 %s2415_s29, 4  ;;  %s2530_s30 = int_to_ptr.vmem [resolvable:$true] %s366_s30 }
  0x16   : > { %3122 = sst [smem:[#allocation26_spill]] %s2413_s28  ;;  %s2525_s14 = sadd.s32 4294967295, %s2413_s28  }
  0x17   : > { %p1787_p0 = scmp.ge.s32.totalorder %s2413_s28, 1  ;;  %p3090_p1 = scmp.eq.s32.totalorder %s2525_s14, 0 }
  0x18   : > { %p354_p2 = scmp.lt.s32.totalorder %s2413_s28, 3  ;;  %s2416_s16 = smov [#allocation11]  }
  0x19   : > { %s392_s17 = sshll.u32 %s2416_s16, 4  ;;  %s2417_s19 = smov [#allocation14]   ;;  %s2545_s17 = int_to_ptr.vmem [resolvable:$true] %s392_s17 }
  0x1a   : > { %p2532_p3 = pnand %p1787_p0, %p354_p2  ;;  %s420_s20 = sshll.u32 %s2417_s19, 4  ;;  %s2547_s20 = int_to_ptr.vmem [resolvable:$true] %s420_s20 }
  0x1b   : > { %s3125_s3 = sld [smem:[#allocation32_spill]] }
  0x1c   : > { %s3123_s15 = scalar_select %p2532_p3, 1, 0 }
  0x1d   : > { %p1960_p5 = pneg %p2532_p3 }
  0x1f   : > { %p2541_p6 = pnand %p1960_p5, %p3090_p1 }
  0x21   : > { %s3124_s18 = scalar_select %p2541_p6, 1, 0 }
  0x22   : > { %s2073_s23 = scalar_lea.hbm %s3125_s3, 512  ;;  %p2557_p8 = pneg %p2541_p6 }
  0x23   : > { %p2074_p7 = scmp.ne.s32.totalorder %s3125_s3, %s2073_s23  ;;  %p2080_p11 = scmp.lt.u32.totalorder %s2073_s23, %s3125_s3 }
  0x24   : > { %s3126_s16 = scalar_select %p2557_p8, 1, 0 }
  0x25   : > { %p2076_p9 = pnand %p2557_p8, %p2074_p7 }
  0x27   : > { %p2077_p10 = pneg %p2076_p9 }
  0x29   : > { %p2082_p12 = pnand %p2080_p11, %p2077_p10 }
  0x2b   : > { %2085 = shalt.err (!%p2082_p12)
}
  0x2c   : > { %s2086_s21 = scalar_lea.vmem %s2530_s30, 512  ;;  %p2094_p5 = scmp.lt.s32.totalorder %s2530_s30, %s2530_s30 }
  0x2d   : > { %p2087_p13 = scmp.ne.s32.totalorder %s2530_s30, %s2086_s21  ;;  %p2095_p4 = scmp.lt.s32.totalorder %s2086_s21, %s2086_s21 }
  0x2f   : > { %p2089_p0 = pnand %p2087_p13, %p2557_p8  ;;  %p2096_p7 = por %p2095_p4, %p2094_p5 }
  0x31   : > { %p2090_p2 = pneg %p2089_p0 }
  0x33   : > { %p2097_p9 = pnand %p2096_p7, %p2090_p2 }
  0x35   : > { %2100 = shalt.err (!%p2097_p9)
}
  0x36   : > { %s3084_s22 = smov 128   ;;  %s3086_s13 = smov 8  }
  0x37   : > { %1963 = dma.hbm_to_vmem [thread:$0]  (!%p2541_p6), %s3125_s3, 512, %s2530_s30, [#allocation9], %s3084_s22, %s3084_s22, %s3086_s13  }
  0x38   : > { %s3127_s5 = sld [smem:[#allocation33_spill]] }
  0x3e   : > { %s2101_s21 = scalar_lea.hbm %s3127_s5, 512 }
  0x3f   : > { %p2102_p4 = scmp.ne.s32.totalorder %s3127_s5, %s2101_s21  ;;  %p2108_p12 = scmp.lt.u32.totalorder %s2101_s21, %s3127_s5 }
  0x41   : > { %p2104_p10 = pnand %p2102_p4, %p2557_p8 }
  0x43   : > { %p2105_p11 = pneg %p2104_p10 }
  0x45   : > { %p2110_p13 = pnand %p2108_p12, %p2105_p11 }
  0x47   : > { %2113 = shalt.err (!%p2110_p13)
}
  0x48   : > { %s2114_s30 = scalar_lea.vmem %s2545_s17, 512  ;;  %p2122_p7 = scmp.lt.s32.totalorder %s2545_s17, %s2545_s17 }
  0x49   : > { %p2115_p0 = scmp.ne.s32.totalorder %s2545_s17, %s2114_s30  ;;  %p2123_p9 = scmp.lt.s32.totalorder %s2114_s30, %s2114_s30 }
  0x4b   : > { %p2117_p2 = pnand %p2115_p0, %p2557_p8  ;;  %p2124_p4 = por %p2123_p9, %p2122_p7 }
  0x4d   : > { %p2118_p5 = pneg %p2117_p2 }
  0x4f   : > { %p2125_p10 = pnand %p2124_p4, %p2118_p5 }
  0x51   : > { %2128 = shalt.err (!%p2125_p10)
}
  0x52   : > { %1969 = dma.hbm_to_vmem [thread:$0]  (!%p2541_p6), %s3127_s5, 512, %s2545_s17, [#allocation12], %s3084_s22, %s3084_s22, %s3086_s13  }
  0x53   : > { %s3128_s8 = sld [smem:[#allocation35_spill]] }
  0x59   : > { %s2129_s23 = scalar_lea.hbm %s3128_s8, 128 }
  0x5a   : > { %p2130_p11 = scmp.ne.s32.totalorder %s3128_s8, %s2129_s23  ;;  %p2136_p0 = scmp.lt.u32.totalorder %s2129_s23, %s3128_s8 }
  0x5c   : > { %p2132_p12 = pnand %p2130_p11, %p2557_p8 }
  0x5e   : > { %p2133_p13 = pneg %p2132_p12 }
  0x60   : > { %p2138_p2 = pnand %p2136_p0, %p2133_p13 }
  0x62   : > { %2141 = shalt.err (!%p2138_p2)
}
  0x63   : > { %s2142_s17 = scalar_lea.vmem %s2547_s20, 128  ;;  %p2150_p4 = scmp.lt.s32.totalorder %s2547_s20, %s2547_s20 }
  0x64   : > { %p2143_p5 = scmp.ne.s32.totalorder %s2547_s20, %s2142_s17  ;;  %p2151_p10 = scmp.lt.s32.totalorder %s2142_s17, %s2142_s17 }
  0x66   : > { %p2145_p7 = pnand %p2143_p5, %p2557_p8  ;;  %p2152_p11 = por %p2151_p10, %p2150_p4 }
  0x68   : > { %p2146_p9 = pneg %p2145_p7 }
  0x6a   : > { %p2153_p12 = pnand %p2152_p11, %p2146_p9 }
  0x6c   : > { %2156 = shalt.err (!%p2153_p12)
}
  0x6d   : > { %1975 = dma.hbm_to_vmem [thread:$0]  (!%p2541_p6), %s3128_s8, 128, %s2547_s20, [#allocation15]  }
  0x6e   : > { %s1786_s9 = sadd.s32 4294967294, %s2413_s28   ;;  %s2632_s10 = sadd.s32 1, %s2413_s28  }
  0x6f   : > { %3129 = sst [smem:[#allocation27_spill]] %s2632_s10  ;;  %s42_s12 = sadd.s32 1, %s2409_s27 }
  0x70   : > { %s39_s23 = ssub.s32 %s2413_s28, %s2632_s10  ;;  %p49_p13 = scmp.ne.s32.totalorder %s2409_s27, %s2405_s26 }
  0x71   : > { %p40_p0 = scmp.eq.s32.totalorder %s39_s23, 0  ;;  %p50_p2 = scmp.eq.s32.totalorder %s2413_s28, 0 }
  0x72   : > { %p55_p5 = scmp.ne.s32.totalorder %s2405_s26, %s2401_s25  ;;  %p341_p7 = scmp.eq.s32.totalorder %s2525_s14, 1 }
  0x73   : > { %s2644_s24 = scalar_select %p40_p0, %s2409_s27, %s42_s12  }
  0x74   : > { %p51_p9 = por %p50_p2, %p49_p13  ;;  %p2648_p4 = por %p3090_p1, %p55_p5 }
  0x75   : > { %3130 = sst [smem:[#allocation28_spill]] %s2644_s24  ;;  %p2652_p10 = por %p341_p7, %p49_p13 }
  0x76   : > { %s3131_s20 = scalar_select %p2648_p4, 1, 0 }
  0x77   : > { %s3132_s29 = scalar_select %p2652_p10, 1, 0 }
  0x78   : > { %p347_p11 = scmp.eq.s32.totalorder %s1786_s9, 1  ;;  %p1999_p12 = scmp.lt.s32.totalorder %s2413_s28, 2 }
  0x79   : > { %3133 = sst [smem:[#allocation29_spill]] %s3132_s29  ;;  %s2658_s19 = sand.u32 1, %s2409_s27  }
  0x7a   : > { %p2660_p3 = por %p347_p11, %p55_p5  ;;  %s2665_s17 = sshll.u32 %s2413_s28, 4 }
  0x7b   : > { %p2667_p0 = pnand %p1999_p12, %p51_p9  ;;  %s470_s6 = sand.u32 1, %s2413_s28  }
  0x7c   : > { %s3134_s21 = scalar_select %p2660_p3, 1, 0 }
  0x7d   : > { %s3136_s30 = scalar_select %p2667_p0, 1, 0 }
  0x7e   : > { %3135 = sst [smem:[#allocation30_spill]] %s3134_s21  ;;  %s3088_s12 = sshll.u32 %s2658_s19, 3 }
  0x7f   : > { %s3137_s1 = sld [smem:[#allocation31_spill]]  ;;  %s474_s13 = scalar_lea.vmem [#allocation5], %s3088_s12 }
  0x80   : > { %s480_s3 = sshll.u32 %s474_s13, 4  ;;  %s2683_s5 = scalar_lea.sflag [#allocation6], %s470_s6  ;;  %s2681_s3 = int_to_ptr.vmem [resolvable:$true] %s480_s3 }
  0x81   : > { %p2689_p2 = pneg %p2667_p0 }
  0x83   : > { %s3138_s24 = scalar_select %p2689_p2, 1, 0 }
  0x85   : > { %s2677_s22 = scalar_lea.hbm %s3137_s1, %s2665_s17  ;;  %s2162_s12 = scalar_lea.hbm %s3137_s1, 256 }
  0x86   : > { %s2157_s8 = scalar_lea.hbm %s2677_s22, 128  ;;  %p2163_p9 = scmp.lt.u32.totalorder %s2677_s22, %s3137_s1 }
  0x87   : > { %p2158_p13 = scmp.ne.s32.totalorder %s2677_s22, %s2157_s8  ;;  %p2164_p11 = scmp.lt.u32.totalorder %s2162_s12, %s2157_s8 }
  0x88   : > { %p2166_p1 = scmp.lt.u32.totalorder %s2157_s8, %s2677_s22 }
  0x89   : > { %p2160_p5 = pnand %p2689_p2, %p2158_p13  ;;  %p2165_p12 = por %p2164_p11, %p2163_p9 }
  0x8b   : > { %p2161_p7 = pneg %p2160_p5  ;;  %p2167_p3 = por %p2166_p1, %p2165_p12 }
  0x8d   : > { %p2168_p10 = pnand %p2167_p3, %p2161_p7 }
  0x8f   : > { %2171 = shalt.err (!%p2168_p10)
}
  0x90   : > { %s2172_s6 = scalar_lea.vmem %s2681_s3, 128  ;;  %s2420_s9 = smov [#allocation5]  }
  0x91   : > { %p2173_p13 = scmp.ne.s32.totalorder %s2681_s3, %s2172_s6  ;;  %s2177_s23 = sshll.u32 %s2420_s9, 4  ;;  %s2178_s23 = int_to_ptr.vmem [resolvable:$false] %s2177_s23 }
  0x92   : > { %s2179_s27 = scalar_lea.vmem %s2178_s23, 256  ;;  %p2180_p6 = scmp.lt.s32.totalorder %s2681_s3, %s2178_s23 }
  0x93   : > { %p2175_p5 = pnand %p2173_p13, %p2689_p2  ;;  %p2181_p8 = scmp.lt.s32.totalorder %s2179_s27, %s2172_s6 }
  0x95   : > { %p2176_p4 = pneg %p2175_p5  ;;  %p2182_p9 = por %p2181_p8, %p2180_p6 }
  0x97   : > { %p2183_p11 = pnand %p2182_p9, %p2176_p4 }
  0x99   : > { %2186 = shalt.err (!%p2183_p11)
}
  0x9a   : > { %s3106_s8 = smov 32   ;;  %s3107_s12 = smov 16  }
  0x9b   : > { %s3108_s13 = smov 1   ;;  %s3139_s9 = sshll.u32 %s2658_s19, 3 }
  0x9c   : > { %1985 = dma.hbm_to_vmem [thread:$0]  (!%p2667_p0), %s2677_s22, 128, %s2681_s3, %s2683_s5, %s3106_s8, %s3107_s12, %s3108_s13  }
  0x9d   : > { %s494_s23 = scalar_lea.vmem [#allocation7], %s3139_s9  ;;  %s2424_s27 = smov [#allocation10]  }
  0x9e   : > { %s500_s6 = sshll.u32 %s494_s23, 4  ;;  %s379_s1 = sshll.u32 %s2424_s27, 4  ;;  %s2718_s6 = int_to_ptr.vmem [resolvable:$true] %s500_s6  ;;  %s380_s1 = int_to_ptr.vmem [resolvable:$true] %s379_s1 }
  0x9f   : > { %s2187_s21 = scalar_lea.hbm %s3071_s4, 512  ;;  %p3140_p3 = scmp.ne.s32.totalorder %s3126_s16, 0 }
  0xa0   : > { %p2188_p1 = scmp.ne.s32.totalorder %s3071_s4, %s2187_s21  ;;  %p2194_p4 = scmp.lt.u32.totalorder %s2187_s21, %s3071_s4 }
  0xa2   : > { %p2190_p6 = pnand %p2188_p1, %p3140_p3 }
  0xa4   : > { %p2191_p8 = pneg %p2190_p6 }
  0xa6   : > { %p2196_p10 = pnand %p2194_p4, %p2191_p8 }
  0xa8   : > { %2199 = shalt.err (!%p2196_p10)
}
  0xa9   : > { %s2200_s9 = scalar_lea.vmem %s380_s1, 512  ;;  %p2208_p5 = scmp.lt.s32.totalorder %s380_s1, %s380_s1 }
  0xaa   : > { %p2201_p7 = scmp.ne.s32.totalorder %s380_s1, %s2200_s9  ;;  %p2209_p9 = scmp.lt.s32.totalorder %s2200_s9, %s2200_s9 }
  0xac   : > { %p2203_p12 = pnand %p2201_p7, %p3140_p3  ;;  %p2210_p11 = por %p2209_p9, %p2208_p5 }
  0xae   : > { %p2204_p13 = pneg %p2203_p12 }
  0xb0   : > { %p2211_p0 = pnand %p2210_p11, %p2204_p13 }
  0xb2   : > { %2214 = shalt.err (!%p2211_p0)
}
  0xb3   : > { %p3141_p1 = scmp.ne.s32.totalorder %s3124_s18, 0  ;;  %s3142_s25 = smov 8  }
  0xb4   : > { %s3143_s28 = smov 128   ;;  %s2425_s21 = smov [#allocation13]  }
  0xb5   : > { %1966 = dma.hbm_to_vmem [thread:$0]  (!%p3141_p1), %s3071_s4, 512, %s380_s1, [#allocation9], %s3143_s28, %s3143_s28, %s3142_s25  }
  0xb6   : > { %s409_s23 = sshll.u32 %s2425_s21, 4  ;;  %s2426_s27 = smov [#allocation16]   ;;  %s410_s23 = int_to_ptr.vmem [resolvable:$true] %s409_s23 }
  0xb7   : > { %s436_s3 = sshll.u32 %s2426_s27, 4  ;;  %s2215_s8 = scalar_lea.hbm %s3074_s7, 128  ;;  %s2741_s3 = int_to_ptr.vmem [resolvable:$true] %s436_s3 }
  0xb8   : > { %p2216_p0 = scmp.ne.s32.totalorder %s3074_s7, %s2215_s8  ;;  %p2222_p4 = scmp.lt.u32.totalorder %s2215_s8, %s3074_s7 }
  0xba   : > { %p2218_p6 = pnand %p2216_p0, %p3140_p3 }
  0xbc   : > { %p2219_p8 = pneg %p2218_p6 }
  0xbe   : > { %p2224_p10 = pnand %p2222_p4, %p2219_p8 }
  0xc0   : > { %2227 = shalt.err (!%p2224_p10)
}
  0xc1   : > { %s2228_s29 = scalar_lea.vmem %s410_s23, 128  ;;  %p2236_p5 = scmp.lt.s32.totalorder %s410_s23, %s410_s23 }
  0xc2   : > { %p2229_p7 = scmp.ne.s32.totalorder %s410_s23, %s2228_s29  ;;  %p2237_p9 = scmp.lt.s32.totalorder %s2228_s29, %s2228_s29 }
  0xc4   : > { %p2231_p12 = pnand %p2229_p7, %p3140_p3  ;;  %p2238_p11 = por %p2237_p9, %p2236_p5 }
  0xc6   : > { %p2232_p13 = pneg %p2231_p12 }
  0xc8   : > { %p2239_p2 = pnand %p2238_p11, %p2232_p13 }
  0xca   : > { %2242 = shalt.err (!%p2239_p2)
}
  0xcb   : > { %1972 = dma.hbm_to_vmem [thread:$0]  (!%p3141_p1), %s3074_s7, 128, %s410_s23, [#allocation12]  }
  0xcc   : > { %s2243_s27 = scalar_lea.hbm %s3078_s11, 512 }
  0xcd   : > { %p2244_p0 = scmp.ne.s32.totalorder %s3078_s11, %s2243_s27  ;;  %p2250_p2 = scmp.lt.u32.totalorder %s2243_s27, %s3078_s11 }
  0xcf   : > { %p2246_p6 = pnand %p2244_p0, %p3140_p3 }
  0xd1   : > { %p2247_p8 = pneg %p2246_p6 }
  0xd3   : > { %p2252_p4 = pnand %p2250_p2, %p2247_p8 }
  0xd5   : > { %2255 = shalt.err (!%p2252_p4)
}
  0xd6   : > { %s2256_s23 = scalar_lea.vmem %s2741_s3, 512  ;;  %p2264_p13 = scmp.lt.s32.totalorder %s2741_s3, %s2741_s3 }
  0xd7   : > { %p2257_p10 = scmp.ne.s32.totalorder %s2741_s3, %s2256_s23  ;;  %p2265_p5 = scmp.lt.s32.totalorder %s2256_s23, %s2256_s23 }
  0xd9   : > { %p2259_p7 = pnand %p2257_p10, %p3140_p3  ;;  %p2266_p9 = por %p2265_p5, %p2264_p13 }
  0xdb   : > { %p2260_p12 = pneg %p2259_p7 }
  0xdd   : > { %p2267_p11 = pnand %p2266_p9, %p2260_p12 }
  0xdf   : > { %2270 = shalt.err (!%p2267_p11)
}
  0xe0   : > { %1978 = dma.hbm_to_vmem [thread:$0]  (!%p3141_p1), %s3078_s11, 512, %s2741_s3, [#allocation15], %s3143_s28, %s3143_s28, %s3142_s25  }
  0xe1   : > { %s2791_s8 = scalar_lea.hbm %s3067_s0, %s2665_s17  ;;  %s456_s18 = scalar_lea.vmem [#allocation2], %s2658_s19 }
  0xe2   : > { %s463_s21 = sshll.u32 %s456_s18, 4  ;;  %s2800_s9 = scalar_lea.hbm %s3069_s2, %s2665_s17  ;;  %s2794_s21 = int_to_ptr.vmem [resolvable:$true] %s463_s21 }
  0xe3   : > { %s454_s10 = scalar_lea.sflag [#allocation3], %s2658_s19  ;;  %s2271_s25 = scalar_lea.hbm %s2791_s8, 16 }
  0xe4   : > { %p2272_p3 = scmp.ne.s32.totalorder %s2791_s8, %s2271_s25  ;;  %p3144_p1 = scmp.ne.s32.totalorder %s3138_s24, 0 }
  0xe5   : > { %s2276_s1 = scalar_lea.hbm %s3067_s0, 32  ;;  %p2277_p8 = scmp.lt.u32.totalorder %s2791_s8, %s3067_s0 }
  0xe6   : > { %p2274_p0 = pnand %p2272_p3, %p3144_p1  ;;  %p2278_p2 = scmp.lt.u32.totalorder %s2276_s1, %s2271_s25 }
  0xe7   : > { %p2280_p10 = scmp.lt.u32.totalorder %s2271_s25, %s2791_s8 }
  0xe8   : > { %p2275_p6 = pneg %p2274_p0  ;;  %p2279_p4 = por %p2278_p2, %p2277_p8 }
  0xea   : > { %p2281_p7 = por %p2280_p10, %p2279_p4 }
  0xec   : > { %p2282_p12 = pnand %p2281_p7, %p2275_p6 }
  0xee   : > { %2285 = shalt.err (!%p2282_p12)
}
  0xef   : > { %s2286_s19 = scalar_lea.vmem %s2794_s21, 16  ;;  %s2427_s17 = smov [#allocation2]  }
  0xf0   : > { %p2287_p13 = scmp.ne.s32.totalorder %s2794_s21, %s2286_s19  ;;  %s2291_s12 = sshll.u32 %s2427_s17, 4  ;;  %s2292_s12 = int_to_ptr.vmem [resolvable:$false] %s2291_s12 }
  0xf1   : > { %s2293_s16 = scalar_lea.vmem %s2292_s12, 32  ;;  %p2294_p11 = scmp.lt.s32.totalorder %s2794_s21, %s2292_s12 }
  0xf2   : > { %p2289_p5 = pnand %p2287_p13, %p3144_p1  ;;  %p2295_p3 = scmp.lt.s32.totalorder %s2293_s16, %s2286_s19 }
  0xf4   : > { %p2290_p9 = pneg %p2289_p5  ;;  %p2296_p0 = por %p2295_p3, %p2294_p11 }
  0xf6   : > { %p2297_p8 = pnand %p2296_p0, %p2290_p9 }
  0xf8   : > { %2300 = shalt.err (!%p2297_p8)
}
  0xf9   : > { %p3145_p6 = scmp.ne.s32.totalorder %s3136_s30, 0  ;;  %s2301_s13 = scalar_lea.hbm %s2800_s9, 128 }
  0xfa   : > { %p2302_p2 = scmp.ne.s32.totalorder %s2800_s9, %s2301_s13  ;;  %s2306_s22 = scalar_lea.hbm %s3069_s2, 256 }
  0xfb   : > { %1982 = dma.hbm_to_vmem [thread:$0]  (!%p3145_p6), %s2791_s8, 16, %s2794_s21, %s454_s10  }
  0xfc   : > { %p2304_p4 = pnand %p2302_p2, %p3144_p1  ;;  %p2307_p7 = scmp.lt.u32.totalorder %s2800_s9, %s3069_s2 }
  0xfd   : > { %p2308_p12 = scmp.lt.u32.totalorder %s2306_s22, %s2301_s13  ;;  %p2310_p5 = scmp.lt.u32.totalorder %s2301_s13, %s2800_s9 }
  0xfe   : > { %p2305_p10 = pneg %p2304_p4 }
  0xff   : > { %p2309_p13 = por %p2308_p12, %p2307_p7 }
 0x101   : > { %p2311_p9 = por %p2310_p5, %p2309_p13 }
 0x103   : > { %p2312_p11 = pnand %p2311_p9, %p2305_p10 }
 0x105   : > { %2315 = shalt.err (!%p2312_p11)
}
 0x106   : > { %s2316_s8 = scalar_lea.vmem %s2718_s6, 128  ;;  %s2428_s21 = smov [#allocation7]  }
 0x107   : > { %p2317_p3 = scmp.ne.s32.totalorder %s2718_s6, %s2316_s8  ;;  %s2321_s10 = sshll.u32 %s2428_s21, 4  ;;  %s2322_s10 = int_to_ptr.vmem [resolvable:$false] %s2321_s10 }
 0x108   : > { %s2323_s3 = scalar_lea.vmem %s2322_s10, 256  ;;  %p2324_p2 = scmp.lt.s32.totalorder %s2718_s6, %s2322_s10 }
 0x109   : > { %p2319_p0 = pnand %p2317_p3, %p3144_p1  ;;  %p2325_p4 = scmp.lt.s32.totalorder %s2323_s3, %s2316_s8 }
 0x10b   : > { %p2320_p8 = pneg %p2319_p0  ;;  %p2326_p7 = por %p2325_p4, %p2324_p2 }
 0x10d   : > { %p2327_p12 = pnand %p2326_p7, %p2320_p8 }
 0x10f   : > { %2330 = shalt.err (!%p2327_p12)
}
 0x110   : > { %s3146_s1 = smov 1   ;;  %s3147_s23 = smov 16  }
 0x111   : > { %s3148_s29 = smov 32   ;;  %p3149_p1 = scmp.ne.s32.totalorder %s3123_s15, 0 }
 0x112   : > { %1988 = dma.hbm_to_vmem [thread:$0]  (!%p3145_p6), %s2800_s9, 128, %s2718_s6, %s2683_s5, %s3148_s29, %s3147_s23, %s3146_s1  }
 0x113   : > { %512 = sbr.rel (%p3149_p1) target bundleno = 1067 (0x42b), region = 72  ;;  %s2852_s24 = sand.u32 (!%p3149_p1), 1, %s2405_s26  }
 0x114   : > { %s515_s19 = scalar_lea.sflag (!%p3149_p1), [#allocation3], %s2852_s24  ;;  %s517_s17 = scalar_lea.vmem (!%p3149_p1), [#allocation2], %s2852_s24 }
 0x115   : > { %p3150_p10 = scmp.ne.s32.totalorder (!%p3149_p1), %s3131_s20, 0 }
 0x11a   : > { %2376 = dma.done.wait (%p3150_p10), %s515_s19, 16  }
 0x11b   : > { %2378 = vsyncadd (%p3150_p10), %s515_s19, 4294967280  ;;  %s522_s5 = sand.u32 1, %s2525_s14   ;;  %s1801_s30 = sshll.u32 %s2852_s24, 3 }
 0x11c   : > { %s523_s15 = scalar_lea.sflag [#allocation6], %s522_s5  ;;  %s2862_s6 = scalar_lea.vmem [#allocation5], %s1801_s30 }
 0x11d   : > { %2380 = dma.done.wait (%p3150_p10), %s523_s15, 256  }
 0x11e   : > { %2382 = vsyncadd (%p3150_p10), %s523_s15, 4294967040  ;;  %s2868_s9 = scalar_lea.vmem [#allocation7], %s1801_s30  ;;  %p3151_p6 = scmp.eq.s32.totalorder %s2525_s14, 0 }
 0x120   : > { %2384 = dma.done.wait (%p3151_p6), [#allocation9], 1024   ;;  %p3152_p13 = pmov %p3151_p6 }
 0x121   : > { %p3153_p5 = pmov %p3151_p6 }
 0x122   : > { %2386 = vsyncadd (%p3152_p13), [#allocation9], 4294966272 }
 0x123   : > { %2388 = dma.done.wait (%p3153_p5), [#allocation12], 640   ;;  %p3154_p9 = pmov %p3153_p5 }
 0x124   : > { %p3155_p11 = pmov %p3153_p5 }
 0x125   : > { %2390 = vsyncadd (%p3154_p9), [#allocation12], 4294966656 }
 0x126   : > { %2392 = dma.done.wait (%p3155_p11), [#allocation15], 640   ;;  %p3156_p3 = pmov %p3153_p5 }
 0x127   : > { %v2429_v0 = vmov 0.0|0.0   ;;  %v724_v1 = vlaneseq  ;;  %vm2430_vm0 = vmmov 0   ;;  %v2431_v2 = vmov 0.0   ;;  %v627_v7 = vld [vmem:[#allocation8] sm:$0xff]  ;;  %v628_v8 = vld [vmem:[#allocation8 + $0x8] sm:$0xff]  ;;  %v629_v12 = vld [vmem:[#allocation8 + $0x10] sm:$0xff] }
 0x128   : > { %2394 = vsyncadd (%p3156_p3), [#allocation15], 4294966656  ;;  %1898 = vmatprep.subr.bf16.mxu0 %v2429_v0  ;;  %1904 = vmatprep.subr.bf16.mxu1 %v2429_v0  ;;  %v2432_v3 = vmov 1966171168   ;;  %v705_v9 = vld [vmem:[#allocation10] sm:$0xff]  ;;  %v1899_v10 = vpack.c.bf16 %v628_v8, %v627_v7  ;;  %v706_v11 = vld [vmem:[#allocation10 + $0x8] sm:$0xff] }
 0x129   : > { %1851 = vmatprep.mubr.msk.f32.mxu0 %vm2430_vm0, %v2431_v2  ;;  %1862 = vmatprep.mubr.msk.f32.mxu1 %vm2430_vm0, %v2431_v2  ;;  %v722_v4 = vunpack.c.l.s4 %v2432_v3  ;;  %v725_v6 = vshrl.u32 %v724_v1, 7  ;;  %v630_v13 = vld [vmem:[#allocation8 + $0x18] sm:$0xff]  ;;  %v1905_v14 = vpack.c.bf16 %v706_v11, %v705_v9  ;;  %v707_v15 = vld [vmem:[#allocation10 + $0x10] sm:$0xff]  ;;  %v611_v19 = vld [vmem:[%s2862_s6] sm:$0x1]  ;;  %vm631_vm1 = vcmask 261120  }
 0x12a   : > { %v708_v16 = vld [vmem:[#allocation10 + $0x18] sm:$0xff]  ;;  %1900 = vmatpush3.bf16.msra.mxu0 %v1899_v10  ;;  %v1902_v18 = vpack.c.bf16 %v630_v13, %v629_v12  ;;  %v612_v20 = vld [vmem:[%s2862_s6 + $0x1] sm:$0x1]  ;;  %v613_v21 = vld [vmem:[%s2862_s6 + $0x2] sm:$0x1]  ;;  %s3157_s16 = sld [smem:[#allocation37_spill]] }
 0x12b   : > { %v723_v5 = vunpack.c.0.s8 %v722_v4  ;;  %1906 = vmatpush3.bf16.msra.mxu1 %v1905_v14  ;;  %1901 = vmatprep.subr.bf16.mxu0 %v2429_v0  ;;  %v1908_v22 = vpack.c.bf16 %v708_v16, %v707_v15  ;;  %v614_v23 = vld [vmem:[%s2862_s6 + $0x3] sm:$0x1]  ;;  %v615_v24 = vld [vmem:[%s2862_s6 + $0x4] sm:$0x1]  ;;  %v616_v25 = vld [vmem:[%s2862_s6 + $0x5] sm:$0x1]  ;;  %v717_v26 = vcombine.low %v611_v19, %v612_v20 }
 0x12c   : > { %1907 = vmatprep.subr.bf16.mxu1 %v2429_v0  ;;  %v617_v27 = vld [vmem:[%s2862_s6 + $0x6] sm:$0x1]  ;;  %v618_v28 = vld [vmem:[%s2862_s6 + $0x7] sm:$0x1]  ;;  %v718_v29 = vcombine.low %v613_v21, %v614_v23  ;;  %v719_v30 = vcombine.low %v615_v24, %v616_v25  ;;  %v610_v33 = vld [vmem:[%s517_s17] sm:$0x1] }
 0x12d   : > { %v2889_v17 = vsub.s32 %v723_v5, %v725_v6  ;;  %v720_v31 = vcombine.low %v617_v27, %v618_v28  ;;  %v838_v48 = vld [vmem:[#allocation11] sm:$0xff]  ;;  %v839_v49 = vld [vmem:[#allocation11 + $0x8] sm:$0xff]  ;;  %v840_v50 = vld [vmem:[#allocation11 + $0x10] sm:$0xff]  ;;  %s3158_s10 = sld [smem:[#allocation36_spill]]  ;;  %vm1384_vm2 = vcmp.lt.s32.totalorder %v724_v1, 32  ;;  %vm1425_vm3 = vcmask 253952  }
 0x12e   : > { %1903 = vmatpush3.bf16.msra.mxu0 %v1902_v18  ;;  %v1911_v51 = vpack.c.bf16 %v839_v49, %v838_v48  ;;  %v841_v52 = vld [vmem:[#allocation11 + $0x18] sm:$0xff]  ;;  %v1040_v14 = vld [vmem:[#allocation13] sm:$0xff]  ;;  %s3159_s23 = sld [smem:[#allocation34_spill]]  ;;  %s3160_s29 = sld [smem:[#allocation29_spill]] }
 0x12f   : > { %v727_v32 = vrot.slane %v717_v26, %v2889_v17  ;;  %v734_v34 = vrot.slane %v718_v29, %v2889_v17  ;;  %v741_v35 = vrot.slane %v719_v30, %v2889_v17  ;;  %1909 = vmatpush3.bf16.msra.mxu1 %v1908_v22  ;;  %v748_v36 = vrot.slane %v720_v31, %v2889_v17  ;;  %v619_v53 = vld [vmem:[%s2868_s9] sm:$0x1]  ;;  %v620_v54 = vld [vmem:[%s2868_s9 + $0x1] sm:$0x1]  ;;  %v621_v55 = vld [vmem:[%s2868_s9 + $0x2] sm:$0x1] }
 0x130   : > { %1910 = vmatprep.subr.bf16.mxu0 %v2429_v0  ;;  %1916 = vmatprep.subr.bf16.mxu1 %v2429_v0  ;;  %v1123_v42 = vld [vmem:[%s3157_s16] sm:$0xff]  ;;  %v1124_v43 = vld [vmem:[%s3157_s16 + $0x8] sm:$0xff]  ;;  %v1125_v45 = vld [vmem:[%s3157_s16 + $0x10] sm:$0xff]  ;;  %v857_v58 = vcombine.low %v619_v53, %v620_v54  ;;  %v1914_v59 = vpack.c.bf16 %v841_v52, %v840_v50  ;;  %v1050_v15 = vcombine.high %v1040_v14, %v1040_v14  ;;  %s3161_s5 = sld [smem:[#allocation38_spill]]  ;;  %s1815_s30 = sshll.u32 %s2525_s14, 4 }
 0x131   : > { %v749_v37 = vcombine.low %v727_v32, %v734_v34  ;;  %1852 = vmatmul.mubr.msk.f32.vlgmr.msra.gmra.mrb[0].mxu0 %vm631_vm1, %v610_v33  ;;  %v750_v38 = vcombine.low %v741_v35, %v748_v36  ;;  %v1917_v44 = vpack.c.bf16 %v1124_v43, %v1123_v42  ;;  %v1126_v46 = vld [vmem:[%s3157_s16 + $0x18] sm:$0xff]  ;;  %v1057_v16 = vrot.slane %v1040_v14, %v2889_v17  ;;  %s609_s15 = scalar_lea.vmem [#allocation17], %s2852_s24  ;;  %s3162_s12 = sld [smem:[#allocation39_spill]] }
 0x132   : > { %1873 = vmatprep.mubr.msk.f32.mxu0 %vm2430_vm0, %v2431_v2  ;;  %v1920_v47 = vpack.c.bf16 %v1126_v46, %v1125_v45  ;;  %v622_v56 = vld [vmem:[%s2868_s9 + $0x3] sm:$0x1]  ;;  %v623_v57 = vld [vmem:[%s2868_s9 + $0x4] sm:$0x1]  ;;  %1912 = vmatpush3.bf16.msra.mxu0 %v1911_v51  ;;  %v624_v60 = vld [vmem:[%s2868_s9 + $0x5] sm:$0x1]  ;;  %v867_v5 = vrot.slane %v857_v58, %v2889_v17  ;;  %v1064_v18 = vrot.slane %v1050_v15, %v2889_v17 }
 0x133   : > { %v757_v39 = vrot.slane %v749_v37, %v2889_v17  ;;  %v764_v40 = vrot.slane %v750_v38, %v2889_v17  ;;  %v625_v61 = vld [vmem:[%s2868_s9 + $0x6] sm:$0x1]  ;;  %v626_v62 = vld [vmem:[%s2868_s9 + $0x7] sm:$0x1]  ;;  %v858_v63 = vcombine.low %v621_v55, %v622_v56  ;;  %1913 = vmatprep.subr.bf16.mxu0 %v2429_v0  ;;  %v859_v3 = vcombine.low %v623_v57, %v624_v60  ;;  %s1623_s6 = sshll.u32 %s609_s15, 4  ;;  %s1611_s18 = scalar_lea.sflag [#allocation4], %s2852_s24  ;;  %s3024_s6 = int_to_ptr.vmem [resolvable:$true] %s1623_s6 }
 0x134   : > { %v860_v4 = vcombine.low %v625_v61, %v626_v62  ;;  %v1065_v19 = vcombine.high %v1057_v16, %v1057_v16  ;;  %v978_v21 = vld [vmem:[%s3158_s10] sm:$0x1]  ;;  %v1066_v22 = vcombine.high %v1064_v18, %v1064_v18  ;;  %v1073_v24 = vrot.slane %v1057_v16, %v2889_v17  ;;  %s2331_s27 = scalar_lea.vmem %s3024_s6, 16  ;;  %p3163_p8 = scmp.ne.s32.totalorder %s3160_s29, 0 }
 0x135   : > { %v765_v41 = vcombine.low %v757_v39, %v764_v40  ;;  %v874_v6 = vrot.slane %v858_v63, %v2889_v17  ;;  %v881_v7 = vrot.slane %v859_v3, %v2889_v17  ;;  %p2332_p0 = scmp.ne.s32.totalorder %s3024_s6, %s2331_s27  ;;  %s2433_s14 = smov [#allocation17]  }
 0x136   : > { %v888_v8 = vrot.slane %v860_v4, %v2889_v17  ;;  %1915 = vmatpush3.bf16.msra.mxu0 %v1914_v59  ;;  %v1087_v25 = vrot.slane %v1065_v19, %v2889_v17  ;;  %v1094_v27 = vrot.slane %v1066_v22, %v2889_v17  ;;  %v1095_v30 = vcombine.high %v1073_v24, %v1073_v24  ;;  %s2335_s22 = sshll.u32 %s2433_s14, 4  ;;  %s2336_s22 = int_to_ptr.vmem [resolvable:$false] %s2335_s22 }
 0x137   : > { %1863 = vmatmul.mubr.msk.f32.vlgmr.msra.gmra.mrb[0].mxu1 %vm631_vm1, %v765_v41  ;;  %v889_v9 = vcombine.low %v867_v5, %v874_v6  ;;  %1922 = vmatprep.subr.bf16.mxu0 %v2429_v0  ;;  %s3022_s13 = scalar_lea.hbm %s3162_s12, %s1815_s30  ;;  %p2333_p2 = pnand %p2332_p0, %p3163_p8 }
 0x138   : > { %1884 = vmatprep.mubr.msk.f32.mxu1 %vm2430_vm0, %v2431_v2  ;;  %1918 = vmatpush3.bf16.msra.mxu1 %v1917_v44  ;;  %v890_v10 = vcombine.low %v881_v7, %v888_v8  ;;  %v1097_v31 = vcombine.high %v1087_v25, %v1087_v25  ;;  %v1098_v40 = vcombine.high %v1094_v27, %v1094_v27  ;;  %s2337_s25 = scalar_lea.vmem %s2336_s22, 32  ;;  %p2338_p7 = scmp.lt.s32.totalorder %s3024_s6, %s2336_s22 }
 0x139   : > { %1919 = vmatprep.subr.bf16.mxu1 %v2429_v0  ;;  %v897_v11 = vrot.slane %v889_v9, %v2889_v17  ;;  %p2334_p4 = pneg %p2333_p2  ;;  %p2339_p12 = scmp.lt.s32.totalorder %s2337_s25, %s2331_s27 }
 0x13a   : > { %v904_v12 = vrot.slane %v890_v10, %v2889_v17 }
 0x13b   : > { %p2340_p1 = por %p2339_p12, %p2338_p7 }
 0x13c   : > { %1921 = vmatpush3.bf16.msra.mxu1 %v1920_v47  ;;  %v905_v13 = vcombine.low %v897_v11, %v904_v12 }
 0x13d   : > { %p2341_p10 = pnand %p2340_p1, %p2334_p4 }
 0x13e   : > { %1874 = vmatmul.mubr.msk.f32.vlgmr.msra.gmra.mrb[2].mxu0 %vm631_vm1, %v905_v13 }
 0x13f   : > { %1895 = vmatprep.mubr.msk.f32.mxu0 %vm2430_vm0, %v2431_v2  ;;  %v1080_v2 = vrot.slane %v1064_v18, %v2889_v17 }
 0x141   : > { %v1096_v36 = vcombine.high %v1080_v2, %v1080_v2 }
 0x204   : > { %v701_v20 = vpop.f32.mrb[0].mxu0 }
 0x205   : > { %v1853_v23 = vpop.f32.mrb[1].mxu0  ;;  %v979_v26 = vadd.f32 %v978_v21, %v701_v20  ;;  %v981_v28 = vmul.f32 0.35355338, %v701_v20 }
 0x207   : > { %v980_v35 = vmul.f32 0.35355338, %v979_v26  ;;  %v1107_v41 = vmul.f32 %v1073_v24, %v981_v28  ;;  %v1108_v42 = vmul.f32 %v1087_v25, %v981_v28  ;;  %v1109_v43 = vmul.f32 %v1095_v30, %v981_v28 }
 0x208   : > { %v1110_v44 = vmul.f32 %v1097_v31, %v981_v28  ;;  %v1111_v50 = vmul.f32 %v1080_v2, %v981_v28  ;;  %v1112_v51 = vmul.f32 %v1094_v27, %v981_v28  ;;  %v1113_v52 = vmul.f32 %v1096_v36, %v981_v28  ;;  %v1531_v27 = vld [vmem:[#allocation16] sm:$0xff]  ;;  %v1534_v31 = vld [vmem:[#allocation16 + $0x18] sm:$0xff] }
 0x209   : > { %v1114_v3 = vmul.f32 %v1098_v40, %v981_v28  ;;  %v1532_v28 = vld [vmem:[#allocation16 + $0x8] sm:$0xff] }
 0x20a   : > { %v834_v29 = vpop.f32.mrb[0].mxu1  ;;  %v1923_v30 = vpack.c.bf16 %v1532_v28, %v1531_v27 }
 0x20b   : > { %v983_v32 = vcombine.high %v834_v29, %v834_v29  ;;  %v990_v33 = vrot.slane %v834_v29, %v2889_v17  ;;  %v1864_v34 = vpop.f32.mrb[1].mxu1  ;;  %v1533_v29 = vld [vmem:[#allocation16 + $0x10] sm:$0xff] }
 0x20c   : > { %1924 = vmatpush3.bf16.msra.mxu0 %v1923_v30 }
 0x20d   : > { %v997_v37 = vrot.slane %v983_v32, %v2889_v17  ;;  %v998_v38 = vcombine.high %v990_v33, %v990_v33  ;;  %v1006_v39 = vrot.slane %v990_v33, %v2889_v17  ;;  %v1926_v32 = vpack.c.bf16 %v1534_v31, %v1533_v29  ;;  %1925 = vmatprep.subr.bf16.mxu0 %v2429_v0  ;;  %v1314_v33 = vld [vmem:[#allocation14] sm:$0xff] }
 0x20e   : > { %v1315_v34 = vmul.f32 0.35355338, %v1314_v33 }
 0x20f   : > { %v999_v45 = vcombine.high %v997_v37, %v997_v37  ;;  %v1013_v46 = vrot.slane %v997_v37, %v2889_v17  ;;  %v1020_v47 = vrot.slane %v998_v38, %v2889_v17  ;;  %v1028_v48 = vcombine.high %v1006_v39, %v1006_v39 }
 0x210   : > { %v1041_v49 = vmul.f32 %v1006_v39, %v980_v35  ;;  %1927 = vmatpush3.bf16.msra.mxu0 %v1926_v32  ;;  %v1324_v36 = vrot.slane %v1315_v34, %v2889_v17 }
 0x211   : > { %v1027_v53 = vrot.slane %v999_v45, %v2889_v17  ;;  %v1029_v54 = vcombine.high %v1013_v46, %v1013_v46  ;;  %v1030_v55 = vcombine.high %v1020_v47, %v1020_v47  ;;  %v1042_v56 = vmul.f32 %v1020_v47, %v980_v35  ;;  %v2971_v26 = vpop.f32.mrb[2].mxu0 }
 0x212   : > { %v1043_v57 = vmul.f32 %v1028_v48, %v980_v35  ;;  %v1045_v58 = vmul.f32 %v1013_v46, %v980_v35  ;;  %v1115_v59 = vadd.f32 %v1107_v41, %v1041_v49  ;;  %v1875_v2 = vpop.f32.mrb[3].mxu0  ;;  %v1332_v38 = vcombine.high %v1324_v36, %v1324_v36 }
 0x213   : > { %v1031_v60 = vcombine.high %v1027_v53, %v1027_v53  ;;  %v1044_v61 = vmul.f32 %v1030_v55, %v980_v35  ;;  %v1046_v62 = vmul.f32 %v1027_v53, %v980_v35  ;;  %v1047_v63 = vmul.f32 %v1029_v54, %v980_v35 }
 0x214   : > { %v1116_v4 = vadd.f32 %v1108_v42, %v1042_v56  ;;  %v1117_v5 = vadd.f32 %v1109_v43, %v1043_v57  ;;  %v1119_v6 = vadd.f32 %v1111_v50, %v1045_v58  ;;  %v1340_v41 = vrot.slane %v1324_v36, %v2889_v17 }
 0x215   : > { %v1048_v7 = vmul.f32 %v1031_v60, %v980_v35  ;;  %v1118_v8 = vadd.f32 %v1110_v44, %v1044_v61  ;;  %v1120_v9 = vadd.f32 %v1112_v51, %v1046_v62  ;;  %v1121_v10 = vadd.f32 %v1113_v52, %v1047_v63 }
 0x216   : > { %v1135_v11 = vcombine.low %v1115_v59, %v1116_v4  ;;  %v1317_v35 = vcombine.high %v1315_v34, %v1315_v34  ;;  %v1354_v43 = vrot.slane %v1332_v38, %v2889_v17  ;;  %v1362_v50 = vcombine.high %v1340_v41, %v1340_v41 }
 0x217   : > { %v1122_v12 = vadd.f32 %v1114_v3, %v1048_v7  ;;  %v1136_v13 = vcombine.low %v1117_v5, %v1118_v8  ;;  %v1137_v14 = vcombine.low %v1119_v6, %v1120_v9 }
 0x218   : > { %v1145_v16 = vrot.slane %v1135_v11, %v2889_v17  ;;  %v1331_v37 = vrot.slane %v1317_v35, %v2889_v17  ;;  %v1364_v52 = vcombine.high %v1354_v43, %v1354_v43 }
 0x219   : > { %v1138_v15 = vcombine.low %v1121_v10, %v1122_v12  ;;  %v1152_v18 = vrot.slane %v1136_v13, %v2889_v17  ;;  %v1159_v19 = vrot.slane %v1137_v14, %v2889_v17 }
 0x21a   : > { %v1333_v39 = vcombine.high %v1331_v37, %v1331_v37  ;;  %v1347_v42 = vrot.slane %v1331_v37, %v2889_v17 }
 0x21b   : > { %v1166_v20 = vrot.slane %v1138_v15, %v2889_v17  ;;  %v1167_v21 = vcombine.low %v1145_v16, %v1152_v18 }
 0x21c   : > { %v1361_v46 = vrot.slane %v1333_v39, %v2889_v17  ;;  %v1363_v51 = vcombine.high %v1347_v42, %v1347_v42 }
 0x21d   : > { %v1168_v22 = vcombine.low %v1159_v19, %v1166_v20  ;;  %v1175_v23 = vrot.slane %v1167_v21, %v2889_v17 }
 0x21e   : > { %v1365_v57 = vcombine.high %v1361_v46, %v1361_v46 }
 0x21f   : > { %v1182_v24 = vrot.slane %v1168_v22, %v2889_v17 }
 0x221   : > { %v1183_v25 = vcombine.low %v1175_v23, %v1182_v24 }
 0x223   : > { %1885 = vmatmul.mubr.msk.f32.vlgmr.msra.gmra.mrb[2].mxu1 %vm631_vm1, %v1183_v25 }
 0x2f6   : > { %v1252_v40 = vpop.f32.mrb[2].mxu1 }
 0x2f7   : > { %v1257_v44 = vcombine.high %v1252_v40, %v1252_v40  ;;  %v1264_v0 = vrot.slane %v1252_v40, %v2889_v17  ;;  %v1886_v45 = vpop.f32.mrb[3].mxu1 }
 0x2f9   : > { %v1271_v47 = vrot.slane %v1257_v44, %v2889_v17  ;;  %v1272_v48 = vcombine.high %v1264_v0, %v1264_v0  ;;  %v1280_v49 = vrot.slane %v1264_v0, %v2889_v17 }
 0x2fb   : > { %v1273_v53 = vcombine.high %v1271_v47, %v1271_v47  ;;  %v1287_v54 = vrot.slane %v1271_v47, %v2889_v17  ;;  %v1294_v55 = vrot.slane %v1272_v48, %v2889_v17  ;;  %v1302_v56 = vcombine.high %v1280_v49, %v1280_v49  ;;  %v1811_v47 = vld [vmem:[%s3159_s23] ss:$0 sm:$0xff] }
 0x2fc   : > { %v1374_v62 = vadd.f32 %v1340_v41, %v1280_v49 }
 0x2fd   : > { %v1301_v58 = vrot.slane %v1273_v53, %v2889_v17  ;;  %v1303_v59 = vcombine.high %v1287_v54, %v1287_v54  ;;  %v1304_v60 = vcombine.high %v1294_v55, %v1294_v55  ;;  %v1375_v61 = vadd.f32 %v1354_v43, %v1294_v55 }
 0x2fe   : > { %v1376_v63 = vadd.f32 %v1362_v50, %v1302_v56  ;;  %v1378_v3 = vadd.f32 %v1347_v42, %v1287_v54  ;;  %v1386_v14 = vsel %vm1384_vm2, %v1374_v62, -inf  ;;  %v975_v53 = vadd.f32 %v1811_v47, %v2971_v26 }
 0x2ff   : > { %v1305_v4 = vcombine.high %v1301_v58, %v1301_v58  ;;  %v1377_v5 = vadd.f32 %v1364_v52, %v1304_v60  ;;  %v1379_v6 = vadd.f32 %v1361_v46, %v1301_v58  ;;  %v1380_v7 = vadd.f32 %v1363_v51, %v1303_v59 }
 0x300   : > { %v1387_v9 = vsel %vm1384_vm2, %v1375_v61, -inf  ;;  %v1390_v10 = vsel %vm1384_vm2, %v1378_v3, -inf  ;;  %v1388_v15 = vsel %vm1384_vm2, %v1376_v63, -inf  ;;  %v1451_v60 = vcombine.high %v975_v53, %v975_v53 }
 0x301   : > { %v1381_v8 = vadd.f32 %v1365_v57, %v1305_v4  ;;  %v1392_v11 = vsel %vm1384_vm2, %v1379_v6, -inf  ;;  %v1394_v13 = vsel %vm1384_vm2, %v1380_v7, -inf  ;;  %v1389_v16 = vsel %vm1384_vm2, %v1377_v5, -inf }
 0x302   : > { %v1393_v12 = vmax.f32 %v1387_v9, %v1392_v11  ;;  %v1391_v19 = vmax.f32 %v1386_v14, %v1390_v10  ;;  %v1395_v20 = vmax.f32 %v1388_v15, %v1394_v13 }
 0x303   : > { %v1396_v18 = vsel %vm1384_vm2, %v1381_v8, -inf }
 0x304   : > { %v1397_v21 = vmax.f32 %v1389_v16, %v1396_v18  ;;  %v1398_v22 = vmax.f32 %v1391_v19, %v1393_v12 }
 0x306   : > { %v1399_v23 = vmax.f32 %v1395_v20, %v1397_v21 }
 0x308   : > { %v1400_v24 = vmax.f32 %v1398_v22, %v1399_v23 }
 0x30a   : > { %v1401_v25 = vsub.f32 %v1374_v62, %v1400_v24  ;;  %v1402_v2 = vsub.f32 %v1375_v61, %v1400_v24  ;;  %v1403_v27 = vsub.f32 %v1376_v63, %v1400_v24  ;;  %v1404_v1 = vsub.f32 %v1377_v5, %v1400_v24 }
 0x30b   : > { %v1405_v28 = vsub.f32 %v1378_v3, %v1400_v24  ;;  %v1406_v32 = vsub.f32 %v1379_v6, %v1400_v24  ;;  %v1407_v34 = vsub.f32 %v1380_v7, %v1400_v24  ;;  %v1408_v36 = vsub.f32 %v1381_v8, %v1400_v24 }
 0x30c   : > { %v1409_v29 = vmul.f32 1.442695, %v1401_v25  ;;  %v1411_v30 = vmul.f32 1.442695, %v1402_v2  ;;  %v1413_v31 = vmul.f32 1.442695, %v1403_v27  ;;  %v1458_v3 = vrot.slane %v975_v53, %v2889_v17 }
 0x30d   : > { %v1415_v33 = vmul.f32 1.442695, %v1404_v1  ;;  %v1417_v35 = vmul.f32 1.442695, %v1405_v28  ;;  %v1419_v37 = vmul.f32 1.442695, %v1406_v32  ;;  %v1465_v5 = vrot.slane %v1451_v60, %v2889_v17 }
 0x30e   : > { %2055 = vpow2.f32 %v1409_v29  ;;  %v1421_v38 = vmul.f32 1.442695, %v1407_v34  ;;  %v1423_v39 = vmul.f32 1.442695, %v1408_v36  ;;  %v1466_v26 = vcombine.high %v1458_v3, %v1458_v3 }
 0x30f   : > { %2057 = vpow2.f32 %v1411_v30  ;;  %v1467_v6 = vcombine.high %v1465_v5, %v1465_v5  ;;  %v1474_v7 = vrot.slane %v1458_v3, %v2889_v17  ;;  %v1481_v9 = vrot.slane %v1465_v5, %v2889_v17 }
 0x310   : > { %2059 = vpow2.f32 %v1413_v31  ;;  %v1488_v8 = vrot.slane %v1466_v26, %v2889_v17 }
 0x311   : > { %2061 = vpow2.f32 %v1415_v33  ;;  %v1495_v10 = vrot.slane %v1467_v6, %v2889_v17  ;;  %v1496_v11 = vcombine.high %v1474_v7, %v1474_v7  ;;  %v1497_v14 = vcombine.high %v1481_v9, %v1481_v9 }
 0x312   : > { %2063 = vpow2.f32 %v1417_v35  ;;  %v1498_v12 = vcombine.high %v1488_v8, %v1488_v8 }
 0x313   : > { %2065 = vpow2.f32 %v1419_v37  ;;  %v1499_v15 = vcombine.high %v1495_v10, %v1495_v10 }
 0x314   : > { %2067 = vpow2.f32 %v1421_v38 }
 0x315   : > { %2069 = vpow2.f32 %v1423_v39 }
 0x318   : > { %v2056_v40 = vpop.eup %2055 }
 0x319   : > { %v2058_v41 = vpop.eup %2057  ;;  %v1426_v42 = vsel %vm1425_vm3, %v2056_v40, 0.0 }
 0x31a   : > { %v2060_v43 = vpop.eup %2059  ;;  %v1427_v44 = vsel %vm1425_vm3, %v2058_v41, 0.0 }
 0x31b   : > { %v2062_v0 = vpop.eup %2061  ;;  %v1428_v45 = vadd.f32 %v1427_v44, %v1426_v42  ;;  %v1429_v46 = vsel %vm1425_vm3, %v2060_v43, 0.0 }
 0x31c   : > { %v2064_v48 = vpop.eup %2063  ;;  %v1431_v50 = vsel %vm1425_vm3, %v2062_v0, 0.0 }
 0x31d   : > { %v1430_v49 = vadd.f32 %v1429_v46, %v1428_v45  ;;  %v2066_v51 = vpop.eup %2065  ;;  %v1433_v54 = vsel %vm1425_vm3, %v2064_v48, 0.0  ;;  %v1535_v45 = vld [vmem:[%s3161_s5] sm:$0x1] }
 0x31e   : > { %v2068_v55 = vpop.eup %2067  ;;  %v1435_v57 = vsel %vm1425_vm3, %v2066_v51, 0.0 }
 0x31f   : > { %v1432_v52 = vadd.f32 %v1431_v50, %v1430_v49  ;;  %v2070_v58 = vpop.eup %2069  ;;  %v1437_v61 = vsel %vm1425_vm3, %v2068_v55, 0.0 }
 0x320   : > { %v1439_v63 = vsel %vm1425_vm3, %v2070_v58, 0.0 }
 0x321   : > { %v1434_v56 = vadd.f32 %v1433_v54, %v1432_v52 }
 0x323   : > { %v1436_v59 = vadd.f32 %v1435_v57, %v1434_v56 }
 0x325   : > { %v1438_v62 = vadd.f32 %v1437_v61, %v1436_v59 }
 0x327   : > { %v1440_v4 = vadd.f32 %v1439_v63, %v1438_v62 }
 0x329   : > { %2071 = vrcp.f32 %v1440_v4 }
 0x333   : > { %v2072_v13 = vpop.eup %2071 }
 0x334   : > { %v1442_v16 = vmul.f32 %v2072_v13, %v2056_v40  ;;  %v1443_v18 = vmul.f32 %v2072_v13, %v2058_v41  ;;  %v1444_v19 = vmul.f32 %v2072_v13, %v2060_v43  ;;  %v1445_v20 = vmul.f32 %v2072_v13, %v2062_v0 }
 0x335   : > { %v1446_v21 = vmul.f32 %v2072_v13, %v2064_v48  ;;  %v1447_v22 = vmul.f32 %v2072_v13, %v2066_v51  ;;  %v1448_v23 = vmul.f32 %v2072_v13, %v2068_v55  ;;  %v1449_v24 = vmul.f32 %v2072_v13, %v2070_v58 }
 0x336   : > { %v1508_v25 = vmul.f32 %v1474_v7, %v1442_v16  ;;  %v1509_v2 = vmul.f32 %v1488_v8, %v1443_v18  ;;  %v1510_v27 = vmul.f32 %v1496_v11, %v1444_v19  ;;  %v1511_v1 = vmul.f32 %v1498_v12, %v1445_v20 }
 0x337   : > { %v1512_v28 = vmul.f32 %v1481_v9, %v1446_v21  ;;  %v1513_v29 = vmul.f32 %v1495_v10, %v1447_v22  ;;  %v1514_v17 = vmul.f32 %v1497_v14, %v1448_v23  ;;  %v1515_v30 = vmul.f32 %v1499_v15, %v1449_v24 }
 0x338   : > { %v1516_v31 = vsel %vm1425_vm3, %v1508_v25, 0.0  ;;  %v1517_v32 = vsel %vm1425_vm3, %v1509_v2, 0.0  ;;  %v1519_v34 = vsel %vm1425_vm3, %v1510_v27, 0.0  ;;  %v1521_v36 = vsel %vm1425_vm3, %v1511_v1, 0.0 }
 0x339   : > { %v1518_v33 = vadd.f32 %v1517_v32, %v1516_v31  ;;  %v1523_v38 = vsel %vm1425_vm3, %v1512_v28, 0.0  ;;  %v1525_v40 = vsel %vm1425_vm3, %v1513_v29, 0.0  ;;  %v1527_v42 = vsel %vm1425_vm3, %v1514_v17, 0.0 }
 0x33a   : > { %v1529_v44 = vsel %vm1425_vm3, %v1515_v30, 0.0 }
 0x33b   : > { %v1520_v35 = vadd.f32 %v1519_v34, %v1518_v33 }
 0x33d   : > { %v1522_v37 = vadd.f32 %v1521_v36, %v1520_v35 }
 0x33f   : > { %v1524_v39 = vadd.f32 %v1523_v38, %v1522_v37 }
 0x341   : > { %v1526_v41 = vadd.f32 %v1525_v40, %v1524_v39 }
 0x343   : > { %v1528_v43 = vadd.f32 %v1527_v42, %v1526_v41 }
 0x345   : > { %v1530_v0 = vadd.f32 %v1529_v44, %v1528_v43 }
 0x347   : > { %1896 = vmatmul.mubr.msk.f32.vlgmr.msra.gmra.mrb[4].mxu0 %vm631_vm1, %v1530_v0 }
 0x41a   : > { %v1605_v46 = vpop.f32.mrb[4].mxu0 }
 0x41b   : > { %v1606_v47 = vadd.f32 %v1605_v46, %v1535_v45  ;;  %v1897_v48 = vpop.f32.mrb[5].mxu0 }
 0x41d   : > { %1609 = vst.msk [vmem:[%s609_s15] sm:$0x1] %vm1425_vm3, %v1606_v47 }
 0x41e   : > { %2344 = shalt.err (!%p2341_p10)
}
 0x41f   : > { %s2345_s24 = scalar_lea.hbm %s3022_s13, 16  ;;  %s2349_s21 = scalar_lea.hbm %s3162_s12, 32 }
 0x420   : > { %p2346_p6 = scmp.ne.s32.totalorder %s3022_s13, %s2345_s24  ;;  %p2350_p9 = scmp.lt.u32.totalorder %s3022_s13, %s3162_s12 }
 0x421   : > { %p2351_p11 = scmp.lt.u32.totalorder %s2349_s21, %s2345_s24  ;;  %p2353_p0 = scmp.lt.u32.totalorder %s2345_s24, %s3022_s13 }
 0x422   : > { %p2347_p13 = pnand %p2346_p6, %p3163_p8 }
 0x423   : > { %p2352_p3 = por %p2351_p11, %p2350_p9 }
 0x424   : > { %p2348_p5 = pneg %p2347_p13 }
 0x425   : > { %p2354_p2 = por %p2353_p0, %p2352_p3 }
 0x427   : > { %p2355_p4 = pnand %p2354_p2, %p2348_p5 }
 0x429   : > { %2358 = shalt.err (!%p2355_p4)
}
 0x42a   : > { %1958 = dma.vmem_to_hbm [thread:$0]  (%p3163_p8), %s3024_s6, 16, %s3022_s13, %s1611_s18  }
 0x42b PF: > { %s3164_s1 = sld [smem:[#allocation24_spill]]  ;;  %s3165_s23 = sld [smem:[#allocation30_spill]] }
 0x42c   : > { %s3166_s19 = sld [smem:[#allocation26_spill]] }
 0x431   : > { %s1635_s17 = sand.u32 1, %s3164_s1   ;;  %p3167_p7 = scmp.ne.s32.totalorder %s3165_s23, 0 }
 0x432   : > { %p3168_p12 = scmp.ge.s32.totalorder %s3166_s19, 2  ;;  %s1636_s5 = scalar_lea.sflag [#allocation4], %s1635_s17 }
 0x434   : > { %p1990_p1 = pnand %p3168_p12, %p3167_p7 }
 0x436   : > { %2396 = dma.done.wait (!%p1990_p1), %s1636_s5, 16  }
 0x437   : > { %2398 = vsyncadd (!%p1990_p1), %s1636_s5, 4294967280  ;;  %s3169_s28 = sld [smem:[#allocation27_spill]]  ;;  %s3170_s30 = sld [smem:[#allocation25_spill]] }
 0x438   : > { %s3171_s27 = sld [smem:[#allocation28_spill]]  ;;  %s3172_s25 = smov %s2405_s26 }
 0x43d   : > { %p32_p10 = scmp.ge.s32.totalorder %s3169_s28, 4   ;;  %s3173_s26 = smov %s3170_s30 }
 0x43f   :  { %34 = sbr.rel (!%p32_p10) target bundleno = 20 (0x14), region = 165 }
 0x446   :  { %1640 = vsyncpa [#allocation3], 1 }
 0x447   :  { %1642 = vsyncpa [#allocation3 + $0x1], 1 }
 0x448   :  { %1643 = vsyncpa [#allocation6], 1 }
 0x449   :  { %1645 = vsyncpa [#allocation6 + $0x1], 1 }
 0x44a   :  { %1646 = vsyncpa [#allocation9], 1 }
 0x44b   :  { %1647 = vsyncpa [#allocation12], 1 }
 0x44c   :  { %1648 = vsyncpa [#allocation15], 1 }
 0x44d   :  { %1649 = vsyncpa [#allocation4], 1 }
 0x44e   :  { %1651 = vsyncpa [#allocation4 + $0x1], 1 }

</bundles_post_ra>
